<compile_context>
chip_gen: v7x
topology: tpu7x:2x2x1
jax: 0.10.0
libtpu: 0.0.40
codegen_flags: <defaults>
</compile_context>

<pallas_src>
import numpy as np
import jax
import jax.numpy as jnp
from jax.experimental import pallas as pl
from jax.experimental.pallas import tpu as pltpu

# ---- LIFRecLayer hyper-parameters (module defaults), f32 like torch ----
ALPHA   = np.float32(0.9)
BETA    = np.float32(0.85)
ALPHARP = np.float32(0.65)
WRP     = np.float32(1.0)
TAU_M   = np.float32(1.0) / (np.float32(1.0) - ALPHA)   # 1/(1-alpha)
TAU_S   = np.float32(1.0) / (np.float32(1.0) - BETA)    # 1/(1-beta)

LANE = 128
SUBLANE = 8


def _round_up(x, m):
    return ((x + m - 1) // m) * m


def _build_fused_kernel(num_layers, tb):
    """One grid step = `tb` timesteps through all layers; states carried in vregs."""

    def kernel(*refs):
        it = iter(refs)
        x_ref = next(it)                                               # (Tb, Bp, d1p0)
        layer_w = [tuple(next(it) for _ in range(2)) for _ in range(num_layers)]  # wcatT, bb
        outs    = [tuple(next(it) for _ in range(2)) for _ in range(num_layers)]  # S, U slabs
        states  = [tuple(next(it) for _ in range(6)) for _ in range(num_layers)]  # P,Q,R,S,Pr,Qr

        c = pl.program_id(0)

        @pl.when(c == 0)
        def _init():                        # lazy zero-init of all neuron states
            for st in states:
                for r in st:
                    r[...] = jnp.zeros_like(r)

        # Load persistent neuron state once per chunk; carry as values (vregs).
        vals = [[r[...] for r in st] for st in states]
        # Hoist the (1, d2p) -> (Bp, d2p) bias broadcasts out of the unrolled loop.
        biases = [jnp.broadcast_to(layer_w[i][1][...], states[i][2].shape)
                  for i in range(num_layers)]

        for tt in range(tb):                # statically unrolled time loop
            x = x_ref[tt]                   # (Bp, d1p) f32 spikes feeding layer 0
            for i in range(num_layers):
                wcatT_ref = layer_w[i][0]
                s_out_ref, u_out_ref = outs[i]
                P, Q, R, S, Pr, Qr = vals[i]

                # LIF state dynamics (compute_state / compute_rec_state) — f32 VPU
                Q_new = BETA * Q + TAU_S * x
                P_new = ALPHA * P + TAU_M * Q                 # uses previous Q
                R_new = ALPHARP * R - S * WRP                 # uses previous S
                Qr_new = BETA * Qr + TAU_S * S                # driven by previous spikes
                Pr_new = ALPHA * Pr + TAU_M * Qr              # uses previous Qr

                # Fused feed-forward + recurrent matmul: K-concat, one MXU call
                lhs = jnp.concatenate([P_new, Pr_new], axis=-1).astype(jnp.bfloat16)
                u = (jnp.dot(lhs, wcatT_ref[...],
                             preferred_element_type=jnp.float32)
                     + biases[i] + R_new)
                s_new = (u > 0.0).astype(jnp.float32)         # SurrGradSpike.forward

                vals[i] = [P_new, Q_new, R_new, s_new, Pr_new, Qr_new]
                s_out_ref[tt] = s_new
                u_out_ref[tt] = u
                x = s_new                   # next layer's input spikes

        # Spill states back to VMEM scratch for the next time chunk.
        for st, v in zip(states, vals):
            for r, vv in zip(st, v):
                r[...] = vv

    return kernel


def _readout_kernel(s_ref, w_ref, b_ref, o_ref):
    """Batched readout over all T*Bp rows: r = S @ WroT + bro (hoisted off the
    serial time/layer critical path)."""
    o_ref[...] = (jnp.dot(s_ref[...].astype(jnp.bfloat16), w_ref[...],
                          preferred_element_type=jnp.float32) + b_ref[...])


class SpikingAgentPallas:
    """Functional re-implementation of SpikingAgent.forward over a sequence."""

    def __init__(self, n_in, n_hidden, n_out, key):
        self.dims = [n_in, *n_hidden, n_out]
        self.n_out = n_out
        self.n_out_p = _round_up(n_out, LANE)
        self.layers = []
        for d1, d2 in zip(self.dims[:-2], self.dims[1:-1]):
            key, k1, k2, k3, k4, k5 = jax.random.split(key, 6)
            # NOTE: the PyTorch init_parameters() zeroes Linear weights; we use small
            # deterministic random weights instead so the kernel compute is non-trivial.
            wb = jax.random.normal(k1, (d2, d1), jnp.float32) * 0.05
            bb = jax.random.uniform(k2, (d2,), jnp.float32, minval=-0.001, maxval=0.001)
            wrec = jax.random.normal(k3, (d2, d2), jnp.float32) * 0.05
            stdv = 0.5 / np.sqrt(d2)        # reset_lc_parameters(readout, 0.5)
            wro = jax.random.uniform(k4, (n_out, d2), jnp.float32, minval=-stdv, maxval=stdv)
            bro = jax.random.uniform(k5, (n_out,), jnp.float32, minval=-stdv, maxval=stdv)

            d1p = _round_up(d1, LANE)
            d2p = _round_up(d2, LANE)
            # rec_mask (zero diagonal) applied on the host.
            wrec = wrec * (1.0 - jnp.eye(d2, dtype=jnp.float32))

            # Fused K-concat weight [WbT ; WrecT], shape (d1p+d2p, d2p), bf16, zero-padded.
            wcatT_p = jnp.zeros((d1p + d2p, d2p), jnp.float32)
            wcatT_p = wcatT_p.at[:d1, :d2].set(wb.T)
            wcatT_p = wcatT_p.at[d1p:d1p + d2, :d2].set(wrec.T)
            wcatT_p = wcatT_p.astype(jnp.bfloat16)

            wroT_p = (jnp.zeros((d2p, self.n_out_p), jnp.float32)
                      .at[:d2, :n_out].set(wro.T).astype(jnp.bfloat16))
            bb_p = jnp.zeros((1, d2p), jnp.float32).at[0, :d2].set(bb)
            bro_p = jnp.zeros((1, self.n_out_p), jnp.float32).at[0, :n_out].set(bro)

            # Unpadded bf16 copies for the pure-JAX reference (same bf16 values).
            wcatT_r = jnp.concatenate([wb.T, wrec.T], axis=0).astype(jnp.bfloat16)
            wroT_r = wro.T.astype(jnp.bfloat16)

            self.layers.append(dict(wcatT=wcatT_p, bb=bb_p, wroT=wroT_p, bro=bro_p,
                                    wcatT_r=wcatT_r, wroT_r=wroT_r, bb_r=bb, bro_r=bro,
                                    d1=d1, d2=d2, d1p=d1p, d2p=d2p))

    # ------------------------- fused Pallas path -------------------------
    def forward_sequence(self, x_seq, U_connect=0.0, time_block=8):
        """Run the agent over a (T, B, ...) input sequence.  Time is chunked into
        blocks of `time_block` steps that run entirely inside one grid step."""
        T, B = x_seq.shape[0], x_seq.shape[1]
        x = x_seq.reshape(T, B, -1).astype(jnp.float32)
        Bp = _round_up(B, SUBLANE)
        d1p0 = self.layers[0]["d1p"]

        tb = min(time_block, T)
        while T % tb:                       # pick a chunk size that divides T
            tb -= 1
        n_chunks = T // tb

        xp = jnp.zeros((T, Bp, d1p0), jnp.float32).at[:, :B, :x.shape[-1]].set(x)

        L = len(self.layers)
        f32 = jnp.float32
        # Whole-array VMEM residency for weights/biases: one copy, no double-buffering.
        vmem_spec = pl.BlockSpec(memory_space=pltpu.MemorySpace.VMEM)

        in_args = [xp]
        in_specs = [pl.BlockSpec((tb, Bp, d1p0), lambda c: (c, 0, 0))]
        for li, p in enumerate(self.layers):
            bb = p["bb"]
            if li == 0:
                # scalar U_connect == a constant bias offset on layer 0 (exact algebra)
                # TODO(synk): tensor-valued U_connect (sparse inter-agent input) would
                # need an extra (B, d2) kernel input; only the scalar case is handled.
                bb = bb.at[0, :p["d2"]].add(jnp.float32(U_connect))
            in_args += [p["wcatT"], bb]
            in_specs += [vmem_spec, vmem_spec]

        out_shape, out_specs = [], []
        tmap = lambda c: (c, 0, 0)
        for p in self.layers:
            d2p = p["d2p"]
            out_shape += [jax.ShapeDtypeStruct((T, Bp, d2p), f32),   # spikes S
                          jax.ShapeDtypeStruct((T, Bp, d2p), f32)]   # membrane U
            out_specs += [pl.BlockSpec((tb, Bp, d2p), tmap),
                          pl.BlockSpec((tb, Bp, d2p), tmap)]

        scratch_shapes = []
        for p in self.layers:
            d1p, d2p = p["d1p"], p["d2p"]
            scratch_shapes += [pltpu.VMEM((Bp, d1p), f32),   # P
                               pltpu.VMEM((Bp, d1p), f32),   # Q
                               pltpu.VMEM((Bp, d2p), f32),   # R
                               pltpu.VMEM((Bp, d2p), f32),   # S
                               pltpu.VMEM((Bp, d2p), f32),   # Pr
                               pltpu.VMEM((Bp, d2p), f32)]   # Qr

        outs = pl.pallas_call(
            _build_fused_kernel(L, tb),
            out_shape=tuple(out_shape),
            grid=(n_chunks,),
            in_specs=in_specs,
            out_specs=tuple(out_specs),
            scratch_shapes=scratch_shapes,
            compiler_params=pltpu.CompilerParams(
                dimension_semantics=("arbitrary",)),   # time chunks are strictly sequential
        )(*in_args)

        # Readout hoisted out of the recurrent kernel: one batched matmul per layer
        # over all T*Bp rows.  (Padded batch rows / padded feature columns never mix
        # with real rows, so slicing below recovers the exact module outputs.)
        r_out, s_out, u_out = [], [], []
        for li, p in enumerate(self.layers):
            s_p, u_p = outs[2 * li], outs[2 * li + 1]
            d2p = p["d2p"]
            s2d = s_p.reshape(T * Bp, d2p)
            r2d = pl.pallas_call(
                _readout_kernel,
                out_shape=jax.ShapeDtypeStruct((T * Bp, self.n_out_p), f32),
            )(s2d, p["wroT"], p["bro"])
            r_out.append(r2d.reshape(T, Bp, self.n_out_p)[:, :B, :self.n_out])
            s_out.append(s_p[:, :B, :p["d2"]])
            u_out.append(u_p[:, :B, :p["d2"]])
        # TODO(synk): do_detach / SurrGradSpike surrogate backward have no meaning in
        # this forward-only implementation; spikes simply feed the next layer.
        return r_out, (s_out, u_out)

    # ------------------- pure-JAX reference (same math) -------------------
    def forward_sequence_ref(self, x_seq, U_connect=0.0):
        T, B = x_seq.shape[0], x_seq.shape[1]
        x_seq = x_seq.reshape(T, B, -1).astype(jnp.float32)
        L = len(self.layers)
        st = []
        for p in self.layers:
            d1, d2 = p["d1"], p["d2"]
            st.append(dict(P=jnp.zeros((B, d1)), Q=jnp.zeros((B, d1)),
                           R=jnp.zeros((B, d2)), S=jnp.zeros((B, d2)),
                           Pr=jnp.zeros((B, d2)), Qr=jnp.zeros((B, d2))))
        r_out = [[] for _ in range(L)]
        s_out = [[] for _ in range(L)]
        u_out = [[] for _ in range(L)]
        for t in range(T):
            x = x_seq[t]
            for i, p in enumerate(self.layers):
                bb = p["bb_r"][None, :]
                if i == 0:
                    bb = bb + jnp.float32(U_connect)
                s_i = st[i]
                Qn = BETA * s_i["Q"] + TAU_S * x
                Pn = ALPHA * s_i["P"] + TAU_M * s_i["Q"]
                Rn = ALPHARP * s_i["R"] - s_i["S"] * WRP
                Qrn = BETA * s_i["Qr"] + TAU_S * s_i["S"]
                Prn = ALPHA * s_i["Pr"] + TAU_M * s_i["Qr"]
                lhs = jnp.concatenate([Pn, Prn], axis=-1).astype(jnp.bfloat16)
                u = (jnp.dot(lhs, p["wcatT_r"], preferred_element_type=jnp.float32)
                     + bb + Rn)
                s = (u > 0.0).astype(jnp.float32)
                ro = (jnp.dot(s.astype(jnp.bfloat16), p["wroT_r"],
                              preferred_element_type=jnp.float32)
                      + p["bro_r"][None, :])
                st[i] = dict(P=Pn, Q=Qn, R=Rn, S=s, Pr=Prn, Qr=Qrn)
                r_out[i].append(ro); s_out[i].append(s); u_out[i].append(u)
                x = s
        r_out = [jnp.stack(r) for r in r_out]
        s_out = [jnp.stack(s) for s in s_out]
        u_out = [jnp.stack(u) for u in u_out]
        return r_out, (s_out, u_out)


if __name__ == "__main__":
    # Small, module-consistent shapes: input (B, C, H, W) = (2, 4, 4, 4) -> n_in = 64
    B, C, H, W = 2, 4, 4, 4
    n_in = C * H * W
    n_hidden = (32, 32)
    n_out = 10
    T = 8            # timesteps
    TIME_BLOCK = 4   # 2 chunks -> exercises cross-chunk state persistence

    key = jax.random.PRNGKey(0)
    kparam, kdata = jax.random.split(key)
    agent = SpikingAgentPallas(n_in, n_hidden, n_out, kparam)

    # binary input spikes over the sequence
    x_seq = (jax.random.uniform(kdata, (T, B, C, H, W), jnp.float32) > 0.5).astype(jnp.float32)

    r_out, (s_out, u_out) = agent.forward_sequence(x_seq, U_connect=0.0, time_block=TIME_BLOCK)
    jax.block_until_ready((r_out, s_out, u_out))

    r_ref, (s_ref, u_ref) = agent.forward_sequence_ref(x_seq, U_connect=0.0)

    for a, b in zip(r_out, r_ref):
        np.testing.assert_allclose(np.asarray(a), np.asarray(b), rtol=2e-4, atol=2e-4)
    for a, b in zip(u_out, u_ref):
        np.testing.assert_allclose(np.asarray(a), np.asarray(b), rtol=2e-4, atol=2e-4)
    for s_k, s_r, u_r in zip(s_out, s_ref, u_ref):
        # spikes are a hard threshold of U; require exact agreement away from U==0
        mask = np.abs(np.asarray(u_r)) > 1e-3
        np.testing.assert_array_equal(np.asarray(s_k)[mask], np.asarray(s_r)[mask])

    print("KERNEL_OK")
</pallas_src>

<mosaic_0001>
module attributes {stable_mosaic.version = 11 : i64} {
  func.func @kernel(%arg0: i32, %arg1: memref<4x8x128xf32, #tpu.memory_space<vmem>>, %arg2: memref<256x128xbf16, #tpu.memory_space<vmem>>, %arg3: memref<1x128xf32, #tpu.memory_space<vmem>>, %arg4: memref<256x128xbf16, #tpu.memory_space<vmem>>, %arg5: memref<1x128xf32, #tpu.memory_space<vmem>>, %arg6: memref<4x8x128xf32, #tpu.memory_space<vmem>>, %arg7: memref<4x8x128xf32, #tpu.memory_space<vmem>>, %arg8: memref<4x8x128xf32, #tpu.memory_space<vmem>>, %arg9: memref<4x8x128xf32, #tpu.memory_space<vmem>>, %arg10: memref<8x128xf32, #tpu.memory_space<vmem>>, %arg11: memref<8x128xf32, #tpu.memory_space<vmem>>, %arg12: memref<8x128xf32, #tpu.memory_space<vmem>>, %arg13: memref<8x128xf32, #tpu.memory_space<vmem>>, %arg14: memref<8x128xf32, #tpu.memory_space<vmem>>, %arg15: memref<8x128xf32, #tpu.memory_space<vmem>>, %arg16: memref<8x128xf32, #tpu.memory_space<vmem>>, %arg17: memref<8x128xf32, #tpu.memory_space<vmem>>, %arg18: memref<8x128xf32, #tpu.memory_space<vmem>>, %arg19: memref<8x128xf32, #tpu.memory_space<vmem>>, %arg20: memref<8x128xf32, #tpu.memory_space<vmem>>, %arg21: memref<8x128xf32, #tpu.memory_space<vmem>>) attributes {dimension_semantics = [#tpu.dimension_semantics<arbitrary>], iteration_bounds = array<i64: 2>, scalar_prefetch = 0 : i64, scratch_operands = 12 : i64, tpu.core_type = #tpu.core_type<tc>, window_params = [{transform_indices = @transform_0, window_bounds = array<i64: 4, 8, 128>}, {pipeline_mode = #tpu.pipeline_mode<synchronous>, transform_indices = @transform_1, window_bounds = array<i64: 256, 128>}, {pipeline_mode = #tpu.pipeline_mode<synchronous>, transform_indices = @transform_2, window_bounds = array<i64: 1, 128>}, {pipeline_mode = #tpu.pipeline_mode<synchronous>, transform_indices = @transform_3, window_bounds = array<i64: 256, 128>}, {pipeline_mode = #tpu.pipeline_mode<synchronous>, transform_indices = @transform_4, window_bounds = array<i64: 1, 128>}, {transform_indices = @transform_5, window_bounds = array<i64: 4, 8, 128>}, {transform_indices = @transform_6, window_bounds = array<i64: 4, 8, 128>}, {transform_indices = @transform_7, window_bounds = array<i64: 4, 8, 128>}, {transform_indices = @transform_8, window_bounds = array<i64: 4, 8, 128>}]} {
    %c0_i32 = arith.constant 0 : i32
    %0 = arith.cmpi eq, %arg0, %c0_i32 : i32
    %1 = arith.extui %0 : i1 to i32
    %c0_i32_0 = arith.constant 0 : i32
    %2 = arith.cmpi ne, %1, %c0_i32_0 : i32
    scf.if %2 {
      %cst_220 = arith.constant 0.000000e+00 : f32
      %369 = vector.broadcast %cst_220 : f32 to vector<8x128xf32>
      %c0_221 = arith.constant 0 : index
      %c0_222 = arith.constant 0 : index
      %370 = vector.load %arg10[%c0_221, %c0_222] : memref<8x128xf32, #tpu.memory_space<vmem>>, vector<8x128xf32>
      tpu.vector_store %arg10[%c0_221, %c0_222], %369 {strides = array<i32>} : memref<8x128xf32, #tpu.memory_space<vmem>>, vector<8x128xf32>,
      %cst_223 = arith.constant 0.000000e+00 : f32
      %371 = vector.broadcast %cst_223 : f32 to vector<8x128xf32>
      %c0_224 = arith.constant 0 : index
      %c0_225 = arith.constant 0 : index
      %372 = vector.load %arg11[%c0_224, %c0_225] : memref<8x128xf32, #tpu.memory_space<vmem>>, vector<8x128xf32>
      tpu.vector_store %arg11[%c0_224, %c0_225], %371 {strides = array<i32>} : memref<8x128xf32, #tpu.memory_space<vmem>>, vector<8x128xf32>,
      %cst_226 = arith.constant 0.000000e+00 : f32
      %373 = vector.broadcast %cst_226 : f32 to vector<8x128xf32>
      %c0_227 = arith.constant 0 : index
      %c0_228 = arith.constant 0 : index
      %374 = vector.load %arg12[%c0_227, %c0_228] : memref<8x128xf32, #tpu.memory_space<vmem>>, vector<8x128xf32>
      tpu.vector_store %arg12[%c0_227, %c0_228], %373 {strides = array<i32>} : memref<8x128xf32, #tpu.memory_space<vmem>>, vector<8x128xf32>,
      %cst_229 = arith.constant 0.000000e+00 : f32
      %375 = vector.broadcast %cst_229 : f32 to vector<8x128xf32>
      %c0_230 = arith.constant 0 : index
      %c0_231 = arith.constant 0 : index
      %376 = vector.load %arg13[%c0_230, %c0_231] : memref<8x128xf32, #tpu.memory_space<vmem>>, vector<8x128xf32>
      tpu.vector_store %arg13[%c0_230, %c0_231], %375 {strides = array<i32>} : memref<8x128xf32, #tpu.memory_space<vmem>>, vector<8x128xf32>,
      %cst_232 = arith.constant 0.000000e+00 : f32
      %377 = vector.broadcast %cst_232 : f32 to vector<8x128xf32>
      %c0_233 = arith.constant 0 : index
      %c0_234 = arith.constant 0 : index
      %378 = vector.load %arg14[%c0_233, %c0_234] : memref<8x128xf32, #tpu.memory_space<vmem>>, vector<8x128xf32>
      tpu.vector_store %arg14[%c0_233, %c0_234], %377 {strides = array<i32>} : memref<8x128xf32, #tpu.memory_space<vmem>>, vector<8x128xf32>,
      %cst_235 = arith.constant 0.000000e+00 : f32
      %379 = vector.broadcast %cst_235 : f32 to vector<8x128xf32>
      %c0_236 = arith.constant 0 : index
      %c0_237 = arith.constant 0 : index
      %380 = vector.load %arg15[%c0_236, %c0_237] : memref<8x128xf32, #tpu.memory_space<vmem>>, vector<8x128xf32>
      tpu.vector_store %arg15[%c0_236, %c0_237], %379 {strides = array<i32>} : memref<8x128xf32, #tpu.memory_space<vmem>>, vector<8x128xf32>,
      %cst_238 = arith.constant 0.000000e+00 : f32
      %381 = vector.broadcast %cst_238 : f32 to vector<8x128xf32>
      %c0_239 = arith.constant 0 : index
      %c0_240 = arith.constant 0 : index
      %382 = vector.load %arg16[%c0_239, %c0_240] : memref<8x128xf32, #tpu.memory_space<vmem>>, vector<8x128xf32>
      tpu.vector_store %arg16[%c0_239, %c0_240], %381 {strides = array<i32>} : memref<8x128xf32, #tpu.memory_space<vmem>>, vector<8x128xf32>,
      %cst_241 = arith.constant 0.000000e+00 : f32
      %383 = vector.broadcast %cst_241 : f32 to vector<8x128xf32>
      %c0_242 = arith.constant 0 : index
      %c0_243 = arith.constant 0 : index
      %384 = vector.load %arg17[%c0_242, %c0_243] : memref<8x128xf32, #tpu.memory_space<vmem>>, vector<8x128xf32>
      tpu.vector_store %arg17[%c0_242, %c0_243], %383 {strides = array<i32>} : memref<8x128xf32, #tpu.memory_space<vmem>>, vector<8x128xf32>,
      %cst_244 = arith.constant 0.000000e+00 : f32
      %385 = vector.broadcast %cst_244 : f32 to vector<8x128xf32>
      %c0_245 = arith.constant 0 : index
      %c0_246 = arith.constant 0 : index
      %386 = vector.load %arg18[%c0_245, %c0_246] : memref<8x128xf32, #tpu.memory_space<vmem>>, vector<8x128xf32>
      tpu.vector_store %arg18[%c0_245, %c0_246], %385 {strides = array<i32>} : memref<8x128xf32, #tpu.memory_space<vmem>>, vector<8x128xf32>,
      %cst_247 = arith.constant 0.000000e+00 : f32
      %387 = vector.broadcast %cst_247 : f32 to vector<8x128xf32>
      %c0_248 = arith.constant 0 : index
      %c0_249 = arith.constant 0 : index
      %388 = vector.load %arg19[%c0_248, %c0_249] : memref<8x128xf32, #tpu.memory_space<vmem>>, vector<8x128xf32>
      tpu.vector_store %arg19[%c0_248, %c0_249], %387 {strides = array<i32>} : memref<8x128xf32, #tpu.memory_space<vmem>>, vector<8x128xf32>,
      %cst_250 = arith.constant 0.000000e+00 : f32
      %389 = vector.broadcast %cst_250 : f32 to vector<8x128xf32>
      %c0_251 = arith.constant 0 : index
      %c0_252 = arith.constant 0 : index
      %390 = vector.load %arg20[%c0_251, %c0_252] : memref<8x128xf32, #tpu.memory_space<vmem>>, vector<8x128xf32>
      tpu.vector_store %arg20[%c0_251, %c0_252], %389 {strides = array<i32>} : memref<8x128xf32, #tpu.memory_space<vmem>>, vector<8x128xf32>,
      %cst_253 = arith.constant 0.000000e+00 : f32
      %391 = vector.broadcast %cst_253 : f32 to vector<8x128xf32>
      %c0_254 = arith.constant 0 : index
      %c0_255 = arith.constant 0 : index
      %392 = vector.load %arg21[%c0_254, %c0_255] : memref<8x128xf32, #tpu.memory_space<vmem>>, vector<8x128xf32>
      tpu.vector_store %arg21[%c0_254, %c0_255], %391 {strides = array<i32>} : memref<8x128xf32, #tpu.memory_space<vmem>>, vector<8x128xf32>,
    } else {
    }
    %c0 = arith.constant 0 : index
    %c0_1 = arith.constant 0 : index
    %3 = vector.load %arg10[%c0, %c0_1] : memref<8x128xf32, #tpu.memory_space<vmem>>, vector<8x128xf32>
    %c0_2 = arith.constant 0 : index
    %c0_3 = arith.constant 0 : index
    %4 = vector.load %arg11[%c0_2, %c0_3] : memref<8x128xf32, #tpu.memory_space<vmem>>, vector<8x128xf32>
    %c0_4 = arith.constant 0 : index
    %c0_5 = arith.constant 0 : index
    %5 = vector.load %arg12[%c0_4, %c0_5] : memref<8x128xf32, #tpu.memory_space<vmem>>, vector<8x128xf32>
    %c0_6 = arith.constant 0 : index
    %c0_7 = arith.constant 0 : index
    %6 = vector.load %arg13[%c0_6, %c0_7] : memref<8x128xf32, #tpu.memory_space<vmem>>, vector<8x128xf32>
    %c0_8 = arith.constant 0 : index
    %c0_9 = arith.constant 0 : index
    %7 = vector.load %arg14[%c0_8, %c0_9] : memref<8x128xf32, #tpu.memory_space<vmem>>, vector<8x128xf32>
    %c0_10 = arith.constant 0 : index
    %c0_11 = arith.constant 0 : index
    %8 = vector.load %arg15[%c0_10, %c0_11] : memref<8x128xf32, #tpu.memory_space<vmem>>, vector<8x128xf32>
    %c0_12 = arith.constant 0 : index
    %c0_13 = arith.constant 0 : index
    %9 = vector.load %arg16[%c0_12, %c0_13] : memref<8x128xf32, #tpu.memory_space<vmem>>, vector<8x128xf32>
    %c0_14 = arith.constant 0 : index
    %c0_15 = arith.constant 0 : index
    %10 = vector.load %arg17[%c0_14, %c0_15] : memref<8x128xf32, #tpu.memory_space<vmem>>, vector<8x128xf32>
    %c0_16 = arith.constant 0 : index
    %c0_17 = arith.constant 0 : index
    %11 = vector.load %arg18[%c0_16, %c0_17] : memref<8x128xf32, #tpu.memory_space<vmem>>, vector<8x128xf32>
    %c0_18 = arith.constant 0 : index
    %c0_19 = arith.constant 0 : index
    %12 = vector.load %arg19[%c0_18, %c0_19] : memref<8x128xf32, #tpu.memory_space<vmem>>, vector<8x128xf32>
    %c0_20 = arith.constant 0 : index
    %c0_21 = arith.constant 0 : index
    %13 = vector.load %arg20[%c0_20, %c0_21] : memref<8x128xf32, #tpu.memory_space<vmem>>, vector<8x128xf32>
    %c0_22 = arith.constant 0 : index
    %c0_23 = arith.constant 0 : index
    %14 = vector.load %arg21[%c0_22, %c0_23] : memref<8x128xf32, #tpu.memory_space<vmem>>, vector<8x128xf32>
    %c0_24 = arith.constant 0 : index
    %c0_25 = arith.constant 0 : index
    %15 = vector.load %arg3[%c0_24, %c0_25] : memref<1x128xf32, #tpu.memory_space<vmem>>, vector<1x128xf32>
    %16 = vector.shape_cast %15 : vector<1x128xf32> to vector<1x128xf32>
    %17 = vector.broadcast %16 : vector<1x128xf32> to vector<8x128xf32>
    %c0_26 = arith.constant 0 : index
    %c0_27 = arith.constant 0 : index
    %18 = vector.load %arg5[%c0_26, %c0_27] : memref<1x128xf32, #tpu.memory_space<vmem>>, vector<1x128xf32>
    %19 = vector.shape_cast %18 : vector<1x128xf32> to vector<1x128xf32>
    %20 = vector.broadcast %19 : vector<1x128xf32> to vector<8x128xf32>
    %c0_28 = arith.constant 0 : index
    %c0_29 = arith.constant 0 : index
    %c0_30 = arith.constant 0 : index
    %21 = vector.load %arg1[%c0_28, %c0_29, %c0_30] : memref<4x8x128xf32, #tpu.memory_space<vmem>>, vector<1x8x128xf32>
    %22 = vector.shape_cast %21 : vector<1x8x128xf32> to vector<8x128xf32>
    %cst = arith.constant 8.500000e-01 : f32
    %23 = vector.broadcast %cst : f32 to vector<8x128xf32>
    %24 = arith.mulf %23, %4 : vector<8x128xf32>
    %cst_31 = arith.constant 6.66666794 : f32
    %25 = vector.broadcast %cst_31 : f32 to vector<8x128xf32>
    %26 = arith.mulf %25, %22 : vector<8x128xf32>
    %27 = arith.addf %24, %26 : vector<8x128xf32>
    %cst_32 = arith.constant 0.899999976 : f32
    %28 = vector.broadcast %cst_32 : f32 to vector<8x128xf32>
    %29 = arith.mulf %28, %3 : vector<8x128xf32>
    %cst_33 = arith.constant 9.99999809 : f32
    %30 = vector.broadcast %cst_33 : f32 to vector<8x128xf32>
    %31 = arith.mulf %30, %4 : vector<8x128xf32>
    %32 = arith.addf %29, %31 : vector<8x128xf32>
    %cst_34 = arith.constant 6.500000e-01 : f32
    %33 = vector.broadcast %cst_34 : f32 to vector<8x128xf32>
    %34 = arith.mulf %33, %5 : vector<8x128xf32>
    %cst_35 = arith.constant 1.000000e+00 : f32
    %35 = vector.broadcast %cst_35 : f32 to vector<8x128xf32>
    %36 = arith.mulf %6, %35 : vector<8x128xf32>
    %37 = arith.subf %34, %36 : vector<8x128xf32>
    %cst_36 = arith.constant 8.500000e-01 : f32
    %38 = vector.broadcast %cst_36 : f32 to vector<8x128xf32>
    %39 = arith.mulf %38, %8 : vector<8x128xf32>
    %cst_37 = arith.constant 6.66666794 : f32
    %40 = vector.broadcast %cst_37 : f32 to vector<8x128xf32>
    %41 = arith.mulf %40, %6 : vector<8x128xf32>
    %42 = arith.addf %39, %41 : vector<8x128xf32>
    %cst_38 = arith.constant 0.899999976 : f32
    %43 = vector.broadcast %cst_38 : f32 to vector<8x128xf32>
    %44 = arith.mulf %43, %7 : vector<8x128xf32>
    %cst_39 = arith.constant 9.99999809 : f32
    %45 = vector.broadcast %cst_39 : f32 to vector<8x128xf32>
    %46 = arith.mulf %45, %8 : vector<8x128xf32>
    %47 = arith.addf %44, %46 : vector<8x128xf32>
    %48 = tpu.concatenate %32, %47 in 1 : vector<8x128xf32>, vector<8x128xf32> -> vector<8x256xf32>
    %49 = arith.truncf %48 : vector<8x256xf32> to vector<8x256xbf16>
    %c0_40 = arith.constant 0 : index
    %c0_41 = arith.constant 0 : index
    %50 = vector.load %arg2[%c0_40, %c0_41] : memref<256x128xbf16, #tpu.memory_space<vmem>>, vector<256x128xbf16>
    %cst_42 = arith.constant dense<0.000000e+00> : vector<8x128xf32>
    %51 = tpu.matmul %49, %50, %cst_42 {dimension_numbers = #tpu.dot_dimension_numbers<[1], [0], [0], [1], [0, 0, 1, 1], [], []>} : vector<8x256xbf16>, vector<256x128xbf16>, vector<8x128xf32> -> vector<8x128xf32>
    %52 = arith.addf %51, %17 : vector<8x128xf32>
    %53 = arith.addf %52, %37 : vector<8x128xf32>
    %cst_43 = arith.constant 0.000000e+00 : f32
    %54 = vector.broadcast %cst_43 : f32 to vector<8x128xf32>
    %55 = arith.cmpf ogt, %53, %54 : vector<8x128xf32>
    %56 = arith.extui %55 : vector<8x128xi1> to vector<8x128xi32>
    %57 = arith.sitofp %56 : vector<8x128xi32> to vector<8x128xf32>
    %c0_44 = arith.constant 0 : index
    %c0_45 = arith.constant 0 : index
    %c0_46 = arith.constant 0 : index
    %58 = vector.load %arg6[%c0_44, %c0_45, %c0_46] : memref<4x8x128xf32, #tpu.memory_space<vmem>>, vector<1x8x128xf32>
    %59 = vector.shape_cast %58 : vector<1x8x128xf32> to vector<8x128xf32>
    %60 = vector.shape_cast %57 : vector<8x128xf32> to vector<1x8x128xf32>
    tpu.vector_store %arg6[%c0_44, %c0_45, %c0_46], %60 {strides = array<i32>} : memref<4x8x128xf32, #tpu.memory_space<vmem>>, vector<1x8x128xf32>,
    %c0_47 = arith.constant 0 : index
    %c0_48 = arith.constant 0 : index
    %c0_49 = arith.constant 0 : index
    %61 = vector.load %arg7[%c0_47, %c0_48, %c0_49] : memref<4x8x128xf32, #tpu.memory_space<vmem>>, vector<1x8x128xf32>
    %62 = vector.shape_cast %61 : vector<1x8x128xf32> to vector<8x128xf32>
    %63 = vector.shape_cast %53 : vector<8x128xf32> to vector<1x8x128xf32>
    tpu.vector_store %arg7[%c0_47, %c0_48, %c0_49], %63 {strides = array<i32>} : memref<4x8x128xf32, #tpu.memory_space<vmem>>, vector<1x8x128xf32>,
    %cst_50 = arith.constant 8.500000e-01 : f32
    %64 = vector.broadcast %cst_50 : f32 to vector<8x128xf32>
    %65 = arith.mulf %64, %10 : vector<8x128xf32>
    %cst_51 = arith.constant 6.66666794 : f32
    %66 = vector.broadcast %cst_51 : f32 to vector<8x128xf32>
    %67 = arith.mulf %66, %57 : vector<8x128xf32>
    %68 = arith.addf %65, %67 : vector<8x128xf32>
    %cst_52 = arith.constant 0.899999976 : f32
    %69 = vector.broadcast %cst_52 : f32 to vector<8x128xf32>
    %70 = arith.mulf %69, %9 : vector<8x128xf32>
    %cst_53 = arith.constant 9.99999809 : f32
    %71 = vector.broadcast %cst_53 : f32 to vector<8x128xf32>
    %72 = arith.mulf %71, %10 : vector<8x128xf32>
    %73 = arith.addf %70, %72 : vector<8x128xf32>
    %cst_54 = arith.constant 6.500000e-01 : f32
    %74 = vector.broadcast %cst_54 : f32 to vector<8x128xf32>
    %75 = arith.mulf %74, %11 : vector<8x128xf32>
    %cst_55 = arith.constant 1.000000e+00 : f32
    %76 = vector.broadcast %cst_55 : f32 to vector<8x128xf32>
    %77 = arith.mulf %12, %76 : vector<8x128xf32>
    %78 = arith.subf %75, %77 : vector<8x128xf32>
    %cst_56 = arith.constant 8.500000e-01 : f32
    %79 = vector.broadcast %cst_56 : f32 to vector<8x128xf32>
    %80 = arith.mulf %79, %14 : vector<8x128xf32>
    %cst_57 = arith.constant 6.66666794 : f32
    %81 = vector.broadcast %cst_57 : f32 to vector<8x128xf32>
    %82 = arith.mulf %81, %12 : vector<8x128xf32>
    %83 = arith.addf %80, %82 : vector<8x128xf32>
    %cst_58 = arith.constant 0.899999976 : f32
    %84 = vector.broadcast %cst_58 : f32 to vector<8x128xf32>
    %85 = arith.mulf %84, %13 : vector<8x128xf32>
    %cst_59 = arith.constant 9.99999809 : f32
    %86 = vector.broadcast %cst_59 : f32 to vector<8x128xf32>
    %87 = arith.mulf %86, %14 : vector<8x128xf32>
    %88 = arith.addf %85, %87 : vector<8x128xf32>
    %89 = tpu.concatenate %73, %88 in 1 : vector<8x128xf32>, vector<8x128xf32> -> vector<8x256xf32>
    %90 = arith.truncf %89 : vector<8x256xf32> to vector<8x256xbf16>
    %c0_60 = arith.constant 0 : index
    %c0_61 = arith.constant 0 : index
    %91 = vector.load %arg4[%c0_60, %c0_61] : memref<256x128xbf16, #tpu.memory_space<vmem>>, vector<256x128xbf16>
    %cst_62 = arith.constant dense<0.000000e+00> : vector<8x128xf32>
    %92 = tpu.matmul %90, %91, %cst_62 {dimension_numbers = #tpu.dot_dimension_numbers<[1], [0], [0], [1], [0, 0, 1, 1], [], []>} : vector<8x256xbf16>, vector<256x128xbf16>, vector<8x128xf32> -> vector<8x128xf32>
    %93 = arith.addf %92, %20 : vector<8x128xf32>
    %94 = arith.addf %93, %78 : vector<8x128xf32>
    %cst_63 = arith.constant 0.000000e+00 : f32
    %95 = vector.broadcast %cst_63 : f32 to vector<8x128xf32>
    %96 = arith.cmpf ogt, %94, %95 : vector<8x128xf32>
    %97 = arith.extui %96 : vector<8x128xi1> to vector<8x128xi32>
    %98 = arith.sitofp %97 : vector<8x128xi32> to vector<8x128xf32>
    %c0_64 = arith.constant 0 : index
    %c0_65 = arith.constant 0 : index
    %c0_66 = arith.constant 0 : index
    %99 = vector.load %arg8[%c0_64, %c0_65, %c0_66] : memref<4x8x128xf32, #tpu.memory_space<vmem>>, vector<1x8x128xf32>
    %100 = vector.shape_cast %99 : vector<1x8x128xf32> to vector<8x128xf32>
    %101 = vector.shape_cast %98 : vector<8x128xf32> to vector<1x8x128xf32>
    tpu.vector_store %arg8[%c0_64, %c0_65, %c0_66], %101 {strides = array<i32>} : memref<4x8x128xf32, #tpu.memory_space<vmem>>, vector<1x8x128xf32>,
    %c0_67 = arith.constant 0 : index
    %c0_68 = arith.constant 0 : index
    %c0_69 = arith.constant 0 : index
    %102 = vector.load %arg9[%c0_67, %c0_68, %c0_69] : memref<4x8x128xf32, #tpu.memory_space<vmem>>, vector<1x8x128xf32>
    %103 = vector.shape_cast %102 : vector<1x8x128xf32> to vector<8x128xf32>
    %104 = vector.shape_cast %94 : vector<8x128xf32> to vector<1x8x128xf32>
    tpu.vector_store %arg9[%c0_67, %c0_68, %c0_69], %104 {strides = array<i32>} : memref<4x8x128xf32, #tpu.memory_space<vmem>>, vector<1x8x128xf32>,
    %c1 = arith.constant 1 : index
    %c0_70 = arith.constant 0 : index
    %c0_71 = arith.constant 0 : index
    %105 = vector.load %arg1[%c1, %c0_70, %c0_71] : memref<4x8x128xf32, #tpu.memory_space<vmem>>, vector<1x8x128xf32>
    %106 = vector.shape_cast %105 : vector<1x8x128xf32> to vector<8x128xf32>
    %cst_72 = arith.constant 8.500000e-01 : f32
    %107 = vector.broadcast %cst_72 : f32 to vector<8x128xf32>
    %108 = arith.mulf %107, %27 : vector<8x128xf32>
    %cst_73 = arith.constant 6.66666794 : f32
    %109 = vector.broadcast %cst_73 : f32 to vector<8x128xf32>
    %110 = arith.mulf %109, %106 : vector<8x128xf32>
    %111 = arith.addf %108, %110 : vector<8x128xf32>
    %cst_74 = arith.constant 0.899999976 : f32
    %112 = vector.broadcast %cst_74 : f32 to vector<8x128xf32>
    %113 = arith.mulf %112, %32 : vector<8x128xf32>
    %cst_75 = arith.constant 9.99999809 : f32
    %114 = vector.broadcast %cst_75 : f32 to vector<8x128xf32>
    %115 = arith.mulf %114, %27 : vector<8x128xf32>
    %116 = arith.addf %113, %115 : vector<8x128xf32>
    %cst_76 = arith.constant 6.500000e-01 : f32
    %117 = vector.broadcast %cst_76 : f32 to vector<8x128xf32>
    %118 = arith.mulf %117, %37 : vector<8x128xf32>
    %cst_77 = arith.constant 1.000000e+00 : f32
    %119 = vector.broadcast %cst_77 : f32 to vector<8x128xf32>
    %120 = arith.mulf %57, %119 : vector<8x128xf32>
    %121 = arith.subf %118, %120 : vector<8x128xf32>
    %cst_78 = arith.constant 8.500000e-01 : f32
    %122 = vector.broadcast %cst_78 : f32 to vector<8x128xf32>
    %123 = arith.mulf %122, %42 : vector<8x128xf32>
    %cst_79 = arith.constant 6.66666794 : f32
    %124 = vector.broadcast %cst_79 : f32 to vector<8x128xf32>
    %125 = arith.mulf %124, %57 : vector<8x128xf32>
    %126 = arith.addf %123, %125 : vector<8x128xf32>
    %cst_80 = arith.constant 0.899999976 : f32
    %127 = vector.broadcast %cst_80 : f32 to vector<8x128xf32>
    %128 = arith.mulf %127, %47 : vector<8x128xf32>
    %cst_81 = arith.constant 9.99999809 : f32
    %129 = vector.broadcast %cst_81 : f32 to vector<8x128xf32>
    %130 = arith.mulf %129, %42 : vector<8x128xf32>
    %131 = arith.addf %128, %130 : vector<8x128xf32>
    %132 = tpu.concatenate %116, %131 in 1 : vector<8x128xf32>, vector<8x128xf32> -> vector<8x256xf32>
    %133 = arith.truncf %132 : vector<8x256xf32> to vector<8x256xbf16>
    %c0_82 = arith.constant 0 : index
    %c0_83 = arith.constant 0 : index
    %134 = vector.load %arg2[%c0_82, %c0_83] : memref<256x128xbf16, #tpu.memory_space<vmem>>, vector<256x128xbf16>
    %cst_84 = arith.constant dense<0.000000e+00> : vector<8x128xf32>
    %135 = tpu.matmul %133, %134, %cst_84 {dimension_numbers = #tpu.dot_dimension_numbers<[1], [0], [0], [1], [0, 0, 1, 1], [], []>} : vector<8x256xbf16>, vector<256x128xbf16>, vector<8x128xf32> -> vector<8x128xf32>
    %136 = arith.addf %135, %17 : vector<8x128xf32>
    %137 = arith.addf %136, %121 : vector<8x128xf32>
    %cst_85 = arith.constant 0.000000e+00 : f32
    %138 = vector.broadcast %cst_85 : f32 to vector<8x128xf32>
    %139 = arith.cmpf ogt, %137, %138 : vector<8x128xf32>
    %140 = arith.extui %139 : vector<8x128xi1> to vector<8x128xi32>
    %141 = arith.sitofp %140 : vector<8x128xi32> to vector<8x128xf32>
    %c1_86 = arith.constant 1 : index
    %c0_87 = arith.constant 0 : index
    %c0_88 = arith.constant 0 : index
    %142 = vector.load %arg6[%c1_86, %c0_87, %c0_88] : memref<4x8x128xf32, #tpu.memory_space<vmem>>, vector<1x8x128xf32>
    %143 = vector.shape_cast %142 : vector<1x8x128xf32> to vector<8x128xf32>
    %144 = vector.shape_cast %141 : vector<8x128xf32> to vector<1x8x128xf32>
    tpu.vector_store %arg6[%c1_86, %c0_87, %c0_88], %144 {strides = array<i32>} : memref<4x8x128xf32, #tpu.memory_space<vmem>>, vector<1x8x128xf32>,
    %c1_89 = arith.constant 1 : index
    %c0_90 = arith.constant 0 : index
    %c0_91 = arith.constant 0 : index
    %145 = vector.load %arg7[%c1_89, %c0_90, %c0_91] : memref<4x8x128xf32, #tpu.memory_space<vmem>>, vector<1x8x128xf32>
    %146 = vector.shape_cast %145 : vector<1x8x128xf32> to vector<8x128xf32>
    %147 = vector.shape_cast %137 : vector<8x128xf32> to vector<1x8x128xf32>
    tpu.vector_store %arg7[%c1_89, %c0_90, %c0_91], %147 {strides = array<i32>} : memref<4x8x128xf32, #tpu.memory_space<vmem>>, vector<1x8x128xf32>,
    %cst_92 = arith.constant 8.500000e-01 : f32
    %148 = vector.broadcast %cst_92 : f32 to vector<8x128xf32>
    %149 = arith.mulf %148, %68 : vector<8x128xf32>
    %cst_93 = arith.constant 6.66666794 : f32
    %150 = vector.broadcast %cst_93 : f32 to vector<8x128xf32>
    %151 = arith.mulf %150, %141 : vector<8x128xf32>
    %152 = arith.addf %149, %151 : vector<8x128xf32>
    %cst_94 = arith.constant 0.899999976 : f32
    %153 = vector.broadcast %cst_94 : f32 to vector<8x128xf32>
    %154 = arith.mulf %153, %73 : vector<8x128xf32>
    %cst_95 = arith.constant 9.99999809 : f32
    %155 = vector.broadcast %cst_95 : f32 to vector<8x128xf32>
    %156 = arith.mulf %155, %68 : vector<8x128xf32>
    %157 = arith.addf %154, %156 : vector<8x128xf32>
    %cst_96 = arith.constant 6.500000e-01 : f32
    %158 = vector.broadcast %cst_96 : f32 to vector<8x128xf32>
    %159 = arith.mulf %158, %78 : vector<8x128xf32>
    %cst_97 = arith.constant 1.000000e+00 : f32
    %160 = vector.broadcast %cst_97 : f32 to vector<8x128xf32>
    %161 = arith.mulf %98, %160 : vector<8x128xf32>
    %162 = arith.subf %159, %161 : vector<8x128xf32>
    %cst_98 = arith.constant 8.500000e-01 : f32
    %163 = vector.broadcast %cst_98 : f32 to vector<8x128xf32>
    %164 = arith.mulf %163, %83 : vector<8x128xf32>
    %cst_99 = arith.constant 6.66666794 : f32
    %165 = vector.broadcast %cst_99 : f32 to vector<8x128xf32>
    %166 = arith.mulf %165, %98 : vector<8x128xf32>
    %167 = arith.addf %164, %166 : vector<8x128xf32>
    %cst_100 = arith.constant 0.899999976 : f32
    %168 = vector.broadcast %cst_100 : f32 to vector<8x128xf32>
    %169 = arith.mulf %168, %88 : vector<8x128xf32>
    %cst_101 = arith.constant 9.99999809 : f32
    %170 = vector.broadcast %cst_101 : f32 to vector<8x128xf32>
    %171 = arith.mulf %170, %83 : vector<8x128xf32>
    %172 = arith.addf %169, %171 : vector<8x128xf32>
    %173 = tpu.concatenate %157, %172 in 1 : vector<8x128xf32>, vector<8x128xf32> -> vector<8x256xf32>
    %174 = arith.truncf %173 : vector<8x256xf32> to vector<8x256xbf16>
    %c0_102 = arith.constant 0 : index
    %c0_103 = arith.constant 0 : index
    %175 = vector.load %arg4[%c0_102, %c0_103] : memref<256x128xbf16, #tpu.memory_space<vmem>>, vector<256x128xbf16>
    %cst_104 = arith.constant dense<0.000000e+00> : vector<8x128xf32>
    %176 = tpu.matmul %174, %175, %cst_104 {dimension_numbers = #tpu.dot_dimension_numbers<[1], [0], [0], [1], [0, 0, 1, 1], [], []>} : vector<8x256xbf16>, vector<256x128xbf16>, vector<8x128xf32> -> vector<8x128xf32>
    %177 = arith.addf %176, %20 : vector<8x128xf32>
    %178 = arith.addf %177, %162 : vector<8x128xf32>
    %cst_105 = arith.constant 0.000000e+00 : f32
    %179 = vector.broadcast %cst_105 : f32 to vector<8x128xf32>
    %180 = arith.cmpf ogt, %178, %179 : vector<8x128xf32>
    %181 = arith.extui %180 : vector<8x128xi1> to vector<8x128xi32>
    %182 = arith.sitofp %181 : vector<8x128xi32> to vector<8x128xf32>
    %c1_106 = arith.constant 1 : index
    %c0_107 = arith.constant 0 : index
    %c0_108 = arith.constant 0 : index
    %183 = vector.load %arg8[%c1_106, %c0_107, %c0_108] : memref<4x8x128xf32, #tpu.memory_space<vmem>>, vector<1x8x128xf32>
    %184 = vector.shape_cast %183 : vector<1x8x128xf32> to vector<8x128xf32>
    %185 = vector.shape_cast %182 : vector<8x128xf32> to vector<1x8x128xf32>
    tpu.vector_store %arg8[%c1_106, %c0_107, %c0_108], %185 {strides = array<i32>} : memref<4x8x128xf32, #tpu.memory_space<vmem>>, vector<1x8x128xf32>,
    %c1_109 = arith.constant 1 : index
    %c0_110 = arith.constant 0 : index
    %c0_111 = arith.constant 0 : index
    %186 = vector.load %arg9[%c1_109, %c0_110, %c0_111] : memref<4x8x128xf32, #tpu.memory_space<vmem>>, vector<1x8x128xf32>
    %187 = vector.shape_cast %186 : vector<1x8x128xf32> to vector<8x128xf32>
    %188 = vector.shape_cast %178 : vector<8x128xf32> to vector<1x8x128xf32>
    tpu.vector_store %arg9[%c1_109, %c0_110, %c0_111], %188 {strides = array<i32>} : memref<4x8x128xf32, #tpu.memory_space<vmem>>, vector<1x8x128xf32>,
    %c2 = arith.constant 2 : index
    %c0_112 = arith.constant 0 : index
    %c0_113 = arith.constant 0 : index
    %189 = vector.load %arg1[%c2, %c0_112, %c0_113] : memref<4x8x128xf32, #tpu.memory_space<vmem>>, vector<1x8x128xf32>
    %190 = vector.shape_cast %189 : vector<1x8x128xf32> to vector<8x128xf32>
    %cst_114 = arith.constant 8.500000e-01 : f32
    %191 = vector.broadcast %cst_114 : f32 to vector<8x128xf32>
    %192 = arith.mulf %191, %111 : vector<8x128xf32>
    %cst_115 = arith.constant 6.66666794 : f32
    %193 = vector.broadcast %cst_115 : f32 to vector<8x128xf32>
    %194 = arith.mulf %193, %190 : vector<8x128xf32>
    %195 = arith.addf %192, %194 : vector<8x128xf32>
    %cst_116 = arith.constant 0.899999976 : f32
    %196 = vector.broadcast %cst_116 : f32 to vector<8x128xf32>
    %197 = arith.mulf %196, %116 : vector<8x128xf32>
    %cst_117 = arith.constant 9.99999809 : f32
    %198 = vector.broadcast %cst_117 : f32 to vector<8x128xf32>
    %199 = arith.mulf %198, %111 : vector<8x128xf32>
    %200 = arith.addf %197, %199 : vector<8x128xf32>
    %cst_118 = arith.constant 6.500000e-01 : f32
    %201 = vector.broadcast %cst_118 : f32 to vector<8x128xf32>
    %202 = arith.mulf %201, %121 : vector<8x128xf32>
    %cst_119 = arith.constant 1.000000e+00 : f32
    %203 = vector.broadcast %cst_119 : f32 to vector<8x128xf32>
    %204 = arith.mulf %141, %203 : vector<8x128xf32>
    %205 = arith.subf %202, %204 : vector<8x128xf32>
    %cst_120 = arith.constant 8.500000e-01 : f32
    %206 = vector.broadcast %cst_120 : f32 to vector<8x128xf32>
    %207 = arith.mulf %206, %126 : vector<8x128xf32>
    %cst_121 = arith.constant 6.66666794 : f32
    %208 = vector.broadcast %cst_121 : f32 to vector<8x128xf32>
    %209 = arith.mulf %208, %141 : vector<8x128xf32>
    %210 = arith.addf %207, %209 : vector<8x128xf32>
    %cst_122 = arith.constant 0.899999976 : f32
    %211 = vector.broadcast %cst_122 : f32 to vector<8x128xf32>
    %212 = arith.mulf %211, %131 : vector<8x128xf32>
    %cst_123 = arith.constant 9.99999809 : f32
    %213 = vector.broadcast %cst_123 : f32 to vector<8x128xf32>
    %214 = arith.mulf %213, %126 : vector<8x128xf32>
    %215 = arith.addf %212, %214 : vector<8x128xf32>
    %216 = tpu.concatenate %200, %215 in 1 : vector<8x128xf32>, vector<8x128xf32> -> vector<8x256xf32>
    %217 = arith.truncf %216 : vector<8x256xf32> to vector<8x256xbf16>
    %c0_124 = arith.constant 0 : index
    %c0_125 = arith.constant 0 : index
    %218 = vector.load %arg2[%c0_124, %c0_125] : memref<256x128xbf16, #tpu.memory_space<vmem>>, vector<256x128xbf16>
    %cst_126 = arith.constant dense<0.000000e+00> : vector<8x128xf32>
    %219 = tpu.matmul %217, %218, %cst_126 {dimension_numbers = #tpu.dot_dimension_numbers<[1], [0], [0], [1], [0, 0, 1, 1], [], []>} : vector<8x256xbf16>, vector<256x128xbf16>, vector<8x128xf32> -> vector<8x128xf32>
    %220 = arith.addf %219, %17 : vector<8x128xf32>
    %221 = arith.addf %220, %205 : vector<8x128xf32>
    %cst_127 = arith.constant 0.000000e+00 : f32
    %222 = vector.broadcast %cst_127 : f32 to vector<8x128xf32>
    %223 = arith.cmpf ogt, %221, %222 : vector<8x128xf32>
    %224 = arith.extui %223 : vector<8x128xi1> to vector<8x128xi32>
    %225 = arith.sitofp %224 : vector<8x128xi32> to vector<8x128xf32>
    %c2_128 = arith.constant 2 : index
    %c0_129 = arith.constant 0 : index
    %c0_130 = arith.constant 0 : index
    %226 = vector.load %arg6[%c2_128, %c0_129, %c0_130] : memref<4x8x128xf32, #tpu.memory_space<vmem>>, vector<1x8x128xf32>
    %227 = vector.shape_cast %226 : vector<1x8x128xf32> to vector<8x128xf32>
    %228 = vector.shape_cast %225 : vector<8x128xf32> to vector<1x8x128xf32>
    tpu.vector_store %arg6[%c2_128, %c0_129, %c0_130], %228 {strides = array<i32>} : memref<4x8x128xf32, #tpu.memory_space<vmem>>, vector<1x8x128xf32>,
    %c2_131 = arith.constant 2 : index
    %c0_132 = arith.constant 0 : index
    %c0_133 = arith.constant 0 : index
    %229 = vector.load %arg7[%c2_131, %c0_132, %c0_133] : memref<4x8x128xf32, #tpu.memory_space<vmem>>, vector<1x8x128xf32>
    %230 = vector.shape_cast %229 : vector<1x8x128xf32> to vector<8x128xf32>
    %231 = vector.shape_cast %221 : vector<8x128xf32> to vector<1x8x128xf32>
    tpu.vector_store %arg7[%c2_131, %c0_132, %c0_133], %231 {strides = array<i32>} : memref<4x8x128xf32, #tpu.memory_space<vmem>>, vector<1x8x128xf32>,
    %cst_134 = arith.constant 8.500000e-01 : f32
    %232 = vector.broadcast %cst_134 : f32 to vector<8x128xf32>
    %233 = arith.mulf %232, %152 : vector<8x128xf32>
    %cst_135 = arith.constant 6.66666794 : f32
    %234 = vector.broadcast %cst_135 : f32 to vector<8x128xf32>
    %235 = arith.mulf %234, %225 : vector<8x128xf32>
    %236 = arith.addf %233, %235 : vector<8x128xf32>
    %cst_136 = arith.constant 0.899999976 : f32
    %237 = vector.broadcast %cst_136 : f32 to vector<8x128xf32>
    %238 = arith.mulf %237, %157 : vector<8x128xf32>
    %cst_137 = arith.constant 9.99999809 : f32
    %239 = vector.broadcast %cst_137 : f32 to vector<8x128xf32>
    %240 = arith.mulf %239, %152 : vector<8x128xf32>
    %241 = arith.addf %238, %240 : vector<8x128xf32>
    %cst_138 = arith.constant 6.500000e-01 : f32
    %242 = vector.broadcast %cst_138 : f32 to vector<8x128xf32>
    %243 = arith.mulf %242, %162 : vector<8x128xf32>
    %cst_139 = arith.constant 1.000000e+00 : f32
    %244 = vector.broadcast %cst_139 : f32 to vector<8x128xf32>
    %245 = arith.mulf %182, %244 : vector<8x128xf32>
    %246 = arith.subf %243, %245 : vector<8x128xf32>
    %cst_140 = arith.constant 8.500000e-01 : f32
    %247 = vector.broadcast %cst_140 : f32 to vector<8x128xf32>
    %248 = arith.mulf %247, %167 : vector<8x128xf32>
    %cst_141 = arith.constant 6.66666794 : f32
    %249 = vector.broadcast %cst_141 : f32 to vector<8x128xf32>
    %250 = arith.mulf %249, %182 : vector<8x128xf32>
    %251 = arith.addf %248, %250 : vector<8x128xf32>
    %cst_142 = arith.constant 0.899999976 : f32
    %252 = vector.broadcast %cst_142 : f32 to vector<8x128xf32>
    %253 = arith.mulf %252, %172 : vector<8x128xf32>
    %cst_143 = arith.constant 9.99999809 : f32
    %254 = vector.broadcast %cst_143 : f32 to vector<8x128xf32>
    %255 = arith.mulf %254, %167 : vector<8x128xf32>
    %256 = arith.addf %253, %255 : vector<8x128xf32>
    %257 = tpu.concatenate %241, %256 in 1 : vector<8x128xf32>, vector<8x128xf32> -> vector<8x256xf32>
    %258 = arith.truncf %257 : vector<8x256xf32> to vector<8x256xbf16>
    %c0_144 = arith.constant 0 : index
    %c0_145 = arith.constant 0 : index
    %259 = vector.load %arg4[%c0_144, %c0_145] : memref<256x128xbf16, #tpu.memory_space<vmem>>, vector<256x128xbf16>
    %cst_146 = arith.constant dense<0.000000e+00> : vector<8x128xf32>
    %260 = tpu.matmul %258, %259, %cst_146 {dimension_numbers = #tpu.dot_dimension_numbers<[1], [0], [0], [1], [0, 0, 1, 1], [], []>} : vector<8x256xbf16>, vector<256x128xbf16>, vector<8x128xf32> -> vector<8x128xf32>
    %261 = arith.addf %260, %20 : vector<8x128xf32>
    %262 = arith.addf %261, %246 : vector<8x128xf32>
    %cst_147 = arith.constant 0.000000e+00 : f32
    %263 = vector.broadcast %cst_147 : f32 to vector<8x128xf32>
    %264 = arith.cmpf ogt, %262, %263 : vector<8x128xf32>
    %265 = arith.extui %264 : vector<8x128xi1> to vector<8x128xi32>
    %266 = arith.sitofp %265 : vector<8x128xi32> to vector<8x128xf32>
    %c2_148 = arith.constant 2 : index
    %c0_149 = arith.constant 0 : index
    %c0_150 = arith.constant 0 : index
    %267 = vector.load %arg8[%c2_148, %c0_149, %c0_150] : memref<4x8x128xf32, #tpu.memory_space<vmem>>, vector<1x8x128xf32>
    %268 = vector.shape_cast %267 : vector<1x8x128xf32> to vector<8x128xf32>
    %269 = vector.shape_cast %266 : vector<8x128xf32> to vector<1x8x128xf32>
    tpu.vector_store %arg8[%c2_148, %c0_149, %c0_150], %269 {strides = array<i32>} : memref<4x8x128xf32, #tpu.memory_space<vmem>>, vector<1x8x128xf32>,
    %c2_151 = arith.constant 2 : index
    %c0_152 = arith.constant 0 : index
    %c0_153 = arith.constant 0 : index
    %270 = vector.load %arg9[%c2_151, %c0_152, %c0_153] : memref<4x8x128xf32, #tpu.memory_space<vmem>>, vector<1x8x128xf32>
    %271 = vector.shape_cast %270 : vector<1x8x128xf32> to vector<8x128xf32>
    %272 = vector.shape_cast %262 : vector<8x128xf32> to vector<1x8x128xf32>
    tpu.vector_store %arg9[%c2_151, %c0_152, %c0_153], %272 {strides = array<i32>} : memref<4x8x128xf32, #tpu.memory_space<vmem>>, vector<1x8x128xf32>,
    %c3 = arith.constant 3 : index
    %c0_154 = arith.constant 0 : index
    %c0_155 = arith.constant 0 : index
    %273 = vector.load %arg1[%c3, %c0_154, %c0_155] : memref<4x8x128xf32, #tpu.memory_space<vmem>>, vector<1x8x128xf32>
    %274 = vector.shape_cast %273 : vector<1x8x128xf32> to vector<8x128xf32>
    %cst_156 = arith.constant 8.500000e-01 : f32
    %275 = vector.broadcast %cst_156 : f32 to vector<8x128xf32>
    %276 = arith.mulf %275, %195 : vector<8x128xf32>
    %cst_157 = arith.constant 6.66666794 : f32
    %277 = vector.broadcast %cst_157 : f32 to vector<8x128xf32>
    %278 = arith.mulf %277, %274 : vector<8x128xf32>
    %279 = arith.addf %276, %278 : vector<8x128xf32>
    %cst_158 = arith.constant 0.899999976 : f32
    %280 = vector.broadcast %cst_158 : f32 to vector<8x128xf32>
    %281 = arith.mulf %280, %200 : vector<8x128xf32>
    %cst_159 = arith.constant 9.99999809 : f32
    %282 = vector.broadcast %cst_159 : f32 to vector<8x128xf32>
    %283 = arith.mulf %282, %195 : vector<8x128xf32>
    %284 = arith.addf %281, %283 : vector<8x128xf32>
    %cst_160 = arith.constant 6.500000e-01 : f32
    %285 = vector.broadcast %cst_160 : f32 to vector<8x128xf32>
    %286 = arith.mulf %285, %205 : vector<8x128xf32>
    %cst_161 = arith.constant 1.000000e+00 : f32
    %287 = vector.broadcast %cst_161 : f32 to vector<8x128xf32>
    %288 = arith.mulf %225, %287 : vector<8x128xf32>
    %289 = arith.subf %286, %288 : vector<8x128xf32>
    %cst_162 = arith.constant 8.500000e-01 : f32
    %290 = vector.broadcast %cst_162 : f32 to vector<8x128xf32>
    %291 = arith.mulf %290, %210 : vector<8x128xf32>
    %cst_163 = arith.constant 6.66666794 : f32
    %292 = vector.broadcast %cst_163 : f32 to vector<8x128xf32>
    %293 = arith.mulf %292, %225 : vector<8x128xf32>
    %294 = arith.addf %291, %293 : vector<8x128xf32>
    %cst_164 = arith.constant 0.899999976 : f32
    %295 = vector.broadcast %cst_164 : f32 to vector<8x128xf32>
    %296 = arith.mulf %295, %215 : vector<8x128xf32>
    %cst_165 = arith.constant 9.99999809 : f32
    %297 = vector.broadcast %cst_165 : f32 to vector<8x128xf32>
    %298 = arith.mulf %297, %210 : vector<8x128xf32>
    %299 = arith.addf %296, %298 : vector<8x128xf32>
    %300 = tpu.concatenate %284, %299 in 1 : vector<8x128xf32>, vector<8x128xf32> -> vector<8x256xf32>
    %301 = arith.truncf %300 : vector<8x256xf32> to vector<8x256xbf16>
    %c0_166 = arith.constant 0 : index
    %c0_167 = arith.constant 0 : index
    %302 = vector.load %arg2[%c0_166, %c0_167] : memref<256x128xbf16, #tpu.memory_space<vmem>>, vector<256x128xbf16>
    %cst_168 = arith.constant dense<0.000000e+00> : vector<8x128xf32>
    %303 = tpu.matmul %301, %302, %cst_168 {dimension_numbers = #tpu.dot_dimension_numbers<[1], [0], [0], [1], [0, 0, 1, 1], [], []>} : vector<8x256xbf16>, vector<256x128xbf16>, vector<8x128xf32> -> vector<8x128xf32>
    %304 = arith.addf %303, %17 : vector<8x128xf32>
    %305 = arith.addf %304, %289 : vector<8x128xf32>
    %cst_169 = arith.constant 0.000000e+00 : f32
    %306 = vector.broadcast %cst_169 : f32 to vector<8x128xf32>
    %307 = arith.cmpf ogt, %305, %306 : vector<8x128xf32>
    %308 = arith.extui %307 : vector<8x128xi1> to vector<8x128xi32>
    %309 = arith.sitofp %308 : vector<8x128xi32> to vector<8x128xf32>
    %c3_170 = arith.constant 3 : index
    %c0_171 = arith.constant 0 : index
    %c0_172 = arith.constant 0 : index
    %310 = vector.load %arg6[%c3_170, %c0_171, %c0_172] : memref<4x8x128xf32, #tpu.memory_space<vmem>>, vector<1x8x128xf32>
    %311 = vector.shape_cast %310 : vector<1x8x128xf32> to vector<8x128xf32>
    %312 = vector.shape_cast %309 : vector<8x128xf32> to vector<1x8x128xf32>
    tpu.vector_store %arg6[%c3_170, %c0_171, %c0_172], %312 {strides = array<i32>} : memref<4x8x128xf32, #tpu.memory_space<vmem>>, vector<1x8x128xf32>,
    %c3_173 = arith.constant 3 : index
    %c0_174 = arith.constant 0 : index
    %c0_175 = arith.constant 0 : index
    %313 = vector.load %arg7[%c3_173, %c0_174, %c0_175] : memref<4x8x128xf32, #tpu.memory_space<vmem>>, vector<1x8x128xf32>
    %314 = vector.shape_cast %313 : vector<1x8x128xf32> to vector<8x128xf32>
    %315 = vector.shape_cast %305 : vector<8x128xf32> to vector<1x8x128xf32>
    tpu.vector_store %arg7[%c3_173, %c0_174, %c0_175], %315 {strides = array<i32>} : memref<4x8x128xf32, #tpu.memory_space<vmem>>, vector<1x8x128xf32>,
    %cst_176 = arith.constant 8.500000e-01 : f32
    %316 = vector.broadcast %cst_176 : f32 to vector<8x128xf32>
    %317 = arith.mulf %316, %236 : vector<8x128xf32>
    %cst_177 = arith.constant 6.66666794 : f32
    %318 = vector.broadcast %cst_177 : f32 to vector<8x128xf32>
    %319 = arith.mulf %318, %309 : vector<8x128xf32>
    %320 = arith.addf %317, %319 : vector<8x128xf32>
    %cst_178 = arith.constant 0.899999976 : f32
    %321 = vector.broadcast %cst_178 : f32 to vector<8x128xf32>
    %322 = arith.mulf %321, %241 : vector<8x128xf32>
    %cst_179 = arith.constant 9.99999809 : f32
    %323 = vector.broadcast %cst_179 : f32 to vector<8x128xf32>
    %324 = arith.mulf %323, %236 : vector<8x128xf32>
    %325 = arith.addf %322, %324 : vector<8x128xf32>
    %cst_180 = arith.constant 6.500000e-01 : f32
    %326 = vector.broadcast %cst_180 : f32 to vector<8x128xf32>
    %327 = arith.mulf %326, %246 : vector<8x128xf32>
    %cst_181 = arith.constant 1.000000e+00 : f32
    %328 = vector.broadcast %cst_181 : f32 to vector<8x128xf32>
    %329 = arith.mulf %266, %328 : vector<8x128xf32>
    %330 = arith.subf %327, %329 : vector<8x128xf32>
    %cst_182 = arith.constant 8.500000e-01 : f32
    %331 = vector.broadcast %cst_182 : f32 to vector<8x128xf32>
    %332 = arith.mulf %331, %251 : vector<8x128xf32>
    %cst_183 = arith.constant 6.66666794 : f32
    %333 = vector.broadcast %cst_183 : f32 to vector<8x128xf32>
    %334 = arith.mulf %333, %266 : vector<8x128xf32>
    %335 = arith.addf %332, %334 : vector<8x128xf32>
    %cst_184 = arith.constant 0.899999976 : f32
    %336 = vector.broadcast %cst_184 : f32 to vector<8x128xf32>
    %337 = arith.mulf %336, %256 : vector<8x128xf32>
    %cst_185 = arith.constant 9.99999809 : f32
    %338 = vector.broadcast %cst_185 : f32 to vector<8x128xf32>
    %339 = arith.mulf %338, %251 : vector<8x128xf32>
    %340 = arith.addf %337, %339 : vector<8x128xf32>
    %341 = tpu.concatenate %325, %340 in 1 : vector<8x128xf32>, vector<8x128xf32> -> vector<8x256xf32>
    %342 = arith.truncf %341 : vector<8x256xf32> to vector<8x256xbf16>
    %c0_186 = arith.constant 0 : index
    %c0_187 = arith.constant 0 : index
    %343 = vector.load %arg4[%c0_186, %c0_187] : memref<256x128xbf16, #tpu.memory_space<vmem>>, vector<256x128xbf16>
    %cst_188 = arith.constant dense<0.000000e+00> : vector<8x128xf32>
    %344 = tpu.matmul %342, %343, %cst_188 {dimension_numbers = #tpu.dot_dimension_numbers<[1], [0], [0], [1], [0, 0, 1, 1], [], []>} : vector<8x256xbf16>, vector<256x128xbf16>, vector<8x128xf32> -> vector<8x128xf32>
    %345 = arith.addf %344, %20 : vector<8x128xf32>
    %346 = arith.addf %345, %330 : vector<8x128xf32>
    %cst_189 = arith.constant 0.000000e+00 : f32
    %347 = vector.broadcast %cst_189 : f32 to vector<8x128xf32>
    %348 = arith.cmpf ogt, %346, %347 : vector<8x128xf32>
    %349 = arith.extui %348 : vector<8x128xi1> to vector<8x128xi32>
    %350 = arith.sitofp %349 : vector<8x128xi32> to vector<8x128xf32>
    %c3_190 = arith.constant 3 : index
    %c0_191 = arith.constant 0 : index
    %c0_192 = arith.constant 0 : index
    %351 = vector.load %arg8[%c3_190, %c0_191, %c0_192] : memref<4x8x128xf32, #tpu.memory_space<vmem>>, vector<1x8x128xf32>
    %352 = vector.shape_cast %351 : vector<1x8x128xf32> to vector<8x128xf32>
    %353 = vector.shape_cast %350 : vector<8x128xf32> to vector<1x8x128xf32>
    tpu.vector_store %arg8[%c3_190, %c0_191, %c0_192], %353 {strides = array<i32>} : memref<4x8x128xf32, #tpu.memory_space<vmem>>, vector<1x8x128xf32>,
    %c3_193 = arith.constant 3 : index
    %c0_194 = arith.constant 0 : index
    %c0_195 = arith.constant 0 : index
    %354 = vector.load %arg9[%c3_193, %c0_194, %c0_195] : memref<4x8x128xf32, #tpu.memory_space<vmem>>, vector<1x8x128xf32>
    %355 = vector.shape_cast %354 : vector<1x8x128xf32> to vector<8x128xf32>
    %356 = vector.shape_cast %346 : vector<8x128xf32> to vector<1x8x128xf32>
    tpu.vector_store %arg9[%c3_193, %c0_194, %c0_195], %356 {strides = array<i32>} : memref<4x8x128xf32, #tpu.memory_space<vmem>>, vector<1x8x128xf32>,
    %c0_196 = arith.constant 0 : index
    %c0_197 = arith.constant 0 : index
    %357 = vector.load %arg10[%c0_196, %c0_197] : memref<8x128xf32, #tpu.memory_space<vmem>>, vector<8x128xf32>
    tpu.vector_store %arg10[%c0_196, %c0_197], %284 {strides = array<i32>} : memref<8x128xf32, #tpu.memory_space<vmem>>, vector<8x128xf32>,
    %c0_198 = arith.constant 0 : index
    %c0_199 = arith.constant 0 : index
    %358 = vector.load %arg11[%c0_198, %c0_199] : memref<8x128xf32, #tpu.memory_space<vmem>>, vector<8x128xf32>
    tpu.vector_store %arg11[%c0_198, %c0_199], %279 {strides = array<i32>} : memref<8x128xf32, #tpu.memory_space<vmem>>, vector<8x128xf32>,
    %c0_200 = arith.constant 0 : index
    %c0_201 = arith.constant 0 : index
    %359 = vector.load %arg12[%c0_200, %c0_201] : memref<8x128xf32, #tpu.memory_space<vmem>>, vector<8x128xf32>
    tpu.vector_store %arg12[%c0_200, %c0_201], %289 {strides = array<i32>} : memref<8x128xf32, #tpu.memory_space<vmem>>, vector<8x128xf32>,
    %c0_202 = arith.constant 0 : index
    %c0_203 = arith.constant 0 : index
    %360 = vector.load %arg13[%c0_202, %c0_203] : memref<8x128xf32, #tpu.memory_space<vmem>>, vector<8x128xf32>
    tpu.vector_store %arg13[%c0_202, %c0_203], %309 {strides = array<i32>} : memref<8x128xf32, #tpu.memory_space<vmem>>, vector<8x128xf32>,
    %c0_204 = arith.constant 0 : index
    %c0_205 = arith.constant 0 : index
    %361 = vector.load %arg14[%c0_204, %c0_205] : memref<8x128xf32, #tpu.memory_space<vmem>>, vector<8x128xf32>
    tpu.vector_store %arg14[%c0_204, %c0_205], %299 {strides = array<i32>} : memref<8x128xf32, #tpu.memory_space<vmem>>, vector<8x128xf32>,
    %c0_206 = arith.constant 0 : index
    %c0_207 = arith.constant 0 : index
    %362 = vector.load %arg15[%c0_206, %c0_207] : memref<8x128xf32, #tpu.memory_space<vmem>>, vector<8x128xf32>
    tpu.vector_store %arg15[%c0_206, %c0_207], %294 {strides = array<i32>} : memref<8x128xf32, #tpu.memory_space<vmem>>, vector<8x128xf32>,
    %c0_208 = arith.constant 0 : index
    %c0_209 = arith.constant 0 : index
    %363 = vector.load %arg16[%c0_208, %c0_209] : memref<8x128xf32, #tpu.memory_space<vmem>>, vector<8x128xf32>
    tpu.vector_store %arg16[%c0_208, %c0_209], %325 {strides = array<i32>} : memref<8x128xf32, #tpu.memory_space<vmem>>, vector<8x128xf32>,
    %c0_210 = arith.constant 0 : index
    %c0_211 = arith.constant 0 : index
    %364 = vector.load %arg17[%c0_210, %c0_211] : memref<8x128xf32, #tpu.memory_space<vmem>>, vector<8x128xf32>
    tpu.vector_store %arg17[%c0_210, %c0_211], %320 {strides = array<i32>} : memref<8x128xf32, #tpu.memory_space<vmem>>, vector<8x128xf32>,
    %c0_212 = arith.constant 0 : index
    %c0_213 = arith.constant 0 : index
    %365 = vector.load %arg18[%c0_212, %c0_213] : memref<8x128xf32, #tpu.memory_space<vmem>>, vector<8x128xf32>
    tpu.vector_store %arg18[%c0_212, %c0_213], %330 {strides = array<i32>} : memref<8x128xf32, #tpu.memory_space<vmem>>, vector<8x128xf32>,
    %c0_214 = arith.constant 0 : index
    %c0_215 = arith.constant 0 : index
    %366 = vector.load %arg19[%c0_214, %c0_215] : memref<8x128xf32, #tpu.memory_space<vmem>>, vector<8x128xf32>
    tpu.vector_store %arg19[%c0_214, %c0_215], %350 {strides = array<i32>} : memref<8x128xf32, #tpu.memory_space<vmem>>, vector<8x128xf32>,
    %c0_216 = arith.constant 0 : index
    %c0_217 = arith.constant 0 : index
    %367 = vector.load %arg20[%c0_216, %c0_217] : memref<8x128xf32, #tpu.memory_space<vmem>>, vector<8x128xf32>
    tpu.vector_store %arg20[%c0_216, %c0_217], %340 {strides = array<i32>} : memref<8x128xf32, #tpu.memory_space<vmem>>, vector<8x128xf32>,
    %c0_218 = arith.constant 0 : index
    %c0_219 = arith.constant 0 : index
    %368 = vector.load %arg21[%c0_218, %c0_219] : memref<8x128xf32, #tpu.memory_space<vmem>>, vector<8x128xf32>
    tpu.vector_store %arg21[%c0_218, %c0_219], %335 {strides = array<i32>} : memref<8x128xf32, #tpu.memory_space<vmem>>, vector<8x128xf32>,
    return
  }
  func.func @transform_0(%arg0: i32) -> (i32, i32, i32) {
    %c0_i32 = arith.constant 0 : i32
    %c0_i32_0 = arith.constant 0 : i32
    %c0_i32_1 = arith.constant 0 : i32
    return %arg0, %c0_i32, %c0_i32_0 : i32, i32, i32
  }
  func.func @transform_1(%arg0: i32) -> (i32, i32) {
    %c0_i32 = arith.constant 0 : i32
    %c0_i32_0 = arith.constant 0 : i32
    %c0_i32_1 = arith.constant 0 : i32
    return %c0_i32, %c0_i32_0 : i32, i32
  }
  func.func @transform_2(%arg0: i32) -> (i32, i32) {
    %c0_i32 = arith.constant 0 : i32
    %c0_i32_0 = arith.constant 0 : i32
    %c0_i32_1 = arith.constant 0 : i32
    return %c0_i32, %c0_i32_0 : i32, i32
  }
  func.func @transform_3(%arg0: i32) -> (i32, i32) {
    %c0_i32 = arith.constant 0 : i32
    %c0_i32_0 = arith.constant 0 : i32
    %c0_i32_1 = arith.constant 0 : i32
    return %c0_i32, %c0_i32_0 : i32, i32
  }
  func.func @transform_4(%arg0: i32) -> (i32, i32) {
    %c0_i32 = arith.constant 0 : i32
    %c0_i32_0 = arith.constant 0 : i32
    %c0_i32_1 = arith.constant 0 : i32
    return %c0_i32, %c0_i32_0 : i32, i32
  }
  func.func @transform_5(%arg0: i32) -> (i32, i32, i32) {
    %c0_i32 = arith.constant 0 : i32
    %c0_i32_0 = arith.constant 0 : i32
    %c0_i32_1 = arith.constant 0 : i32
    return %arg0, %c0_i32, %c0_i32_0 : i32, i32, i32
  }
  func.func @transform_6(%arg0: i32) -> (i32, i32, i32) {
    %c0_i32 = arith.constant 0 : i32
    %c0_i32_0 = arith.constant 0 : i32
    %c0_i32_1 = arith.constant 0 : i32
    return %arg0, %c0_i32, %c0_i32_0 : i32, i32, i32
  }
  func.func @transform_7(%arg0: i32) -> (i32, i32, i32) {
    %c0_i32 = arith.constant 0 : i32
    %c0_i32_0 = arith.constant 0 : i32
    %c0_i32_1 = arith.constant 0 : i32
    return %arg0, %c0_i32, %c0_i32_0 : i32, i32, i32
  }
  func.func @transform_8(%arg0: i32) -> (i32, i32, i32) {
    %c0_i32 = arith.constant 0 : i32
    %c0_i32_0 = arith.constant 0 : i32
    %c0_i32_1 = arith.constant 0 : i32
    return %arg0, %c0_i32, %c0_i32_0 : i32, i32, i32
  }
}

</mosaic_0001>

<bundles_post_ra>
// kernel: tpu_custom_call.1
= control target key start
LH: loop header
LB: loop body
LE: loop exit
PB: predicated region body
PF: predicated region fallthrough
CT: control target
= control target key end

     0   :  { %s3689_s0 = inlined_call_operand.hbm [shape: f32[8,8,128], index: 0, kind: input, shape index: {}]   ;;  %s3690_s1 = inlined_call_operand.hbm [shape: bf16[256,128], index: 1, kind: input, shape index: {}]   ;;  %s3691_s2 = inlined_call_operand.vmem [shape: f32[1,128], index: 2, kind: input, shape index: {}]   ;;  %s3692_s3 = inlined_call_operand.hbm [shape: bf16[256,128], index: 3, kind: input, shape index: {}]   ;;  %s3693_s4 = inlined_call_operand.vmem [shape: f32[1,128], index: 4, kind: input, shape index: {}]   ;;  %s3694_s5 = inlined_call_operand.hbm [shape: f32[8,8,128], index: 5, kind: output, shape index: {0}]   ;;  %s3695_s6 = inlined_call_operand.hbm [shape: f32[8,8,128], index: 6, kind: output, shape index: {1}]   ;;  %s3696_s7 = inlined_call_operand.hbm [shape: f32[8,8,128], index: 7, kind: output, shape index: {2}]   ;;  %s3697_s8 = inlined_call_operand.hbm [shape: f32[8,8,128], index: 8, kind: output, shape index: {3}]  }
   0x1   :  { %3704 = sst [smem:[#allocation31_spill]] %s3689_s0 }
   0x2   :  { %3705 = sst [smem:[#allocation32_spill]] %s3690_s1 }
   0x3   :  { %3706 = sst [smem:[#allocation33_spill]] %s3691_s2 }
   0x4   :  { %14 = vsyncpa [#allocation15], 0 }
   0x5   :  { %16 = vsyncpa [#allocation15 + $0x1], 0 }
   0x6   :  { %17 = vsyncpa [#allocation18], 0 }
   0x7   :  { %18 = vsyncpa [#allocation16], 0 }
   0x8   :  { %20 = vsyncpa [#allocation16 + $0x1], 0 }
   0x9   :  { %21 = vsyncpa [#allocation22], 0 }
   0xa   :  { %23 = vsyncpa [#allocation22 + $0x1], 0 }
   0xb   :  { %24 = vsyncpa [#allocation25], 0 }
   0xc   :  { %26 = vsyncpa [#allocation25 + $0x1], 0  ;;  %s3132_s27 = smov 0   ;;  %s3134_s28 = smov 0  }
   0xd   :  { %s3136_s29 = smov 0   ;;  %s3138_s30 = smov 0  }
   0xe LB: > { %s3153_s9 = sadd.s32 4294967295, %s3070_s30   ;;  %s3699_s10 = sadd.s32 4294967294, %s3070_s30   ;;  %s3070_s30 = sphi %s3138_s30, %s3730_s30   ;;  %s3066_s29 = sphi %s3136_s29, %s3729_s29   ;;  %s3062_s28 = sphi %s3134_s28, %s3728_s28   ;;  %s3058_s27 = sphi %s3132_s27, %s3727_s27  }
   0xf   : > { %p52_p0 = scmp.ne.s32.totalorder %s3062_s28, %s3058_s27  ;;  %p3698_p1 = scmp.eq.s32.totalorder %s3153_s9, 0 }
  0x10   : > { %p166_p3 = scmp.eq.s32.totalorder %s3699_s10, 1  ;;  %p2240_p5 = scmp.ge.s32.totalorder %s3070_s30, 1 }
  0x11   : > { %p3164_p4 = por %p3698_p1, %p52_p0  ;;  %p251_p7 = scmp.lt.s32.totalorder %s3070_s30, 3 }
  0x12   : > { %p3169_p6 = por %p166_p3, %p52_p0  ;;  %s3072_s14 = smov [#allocation17]  }
  0x13   : > { %s3707_s11 = scalar_select %p3164_p4, 1, 0 }
  0x14   : > { %s3708_s12 = scalar_select %p3169_p6, 1, 0 }
  0x15   : > { %p3175_p9 = pnand %p2240_p5, %p251_p7  ;;  %s263_s15 = sshll.u32 %s3072_s14, 4  ;;  %s3179_s15 = int_to_ptr.vmem [resolvable:$true] %s263_s15 }
  0x16   : > { %s3073_s17 = smov [#allocation19]   ;;  %s3711_s1 = sld [smem:[#allocation32_spill]] }
  0x17   : > { %p2622_p10 = pneg %p3175_p9  ;;  %s279_s18 = sshll.u32 %s3073_s17, 4  ;;  %s3190_s18 = int_to_ptr.vmem [resolvable:$true] %s279_s18 }
  0x19   : > { %p3186_p12 = pnand %p2622_p10, %p3698_p1 }
  0x1b   : > { %p2824_p0 = pneg %p3186_p12 }
  0x1c   : > { %s2822_s21 = scalar_lea.hbm %s3711_s1, 2048 }
  0x1d   : > { %p2823_p13 = scmp.ne.s32.totalorder %s3711_s1, %s2822_s21  ;;  %p2829_p7 = scmp.lt.u32.totalorder %s2822_s21, %s3711_s1 }
  0x1f   : > { %p2825_p3 = pnand %p2824_p0, %p2823_p13 }
  0x21   : > { %p2826_p5 = pneg %p2825_p3 }
  0x23   : > { %p2831_p10 = pnand %p2829_p7, %p2826_p5 }
  0x25   : > { %2834 = shalt.err (!%p2831_p10)
}
  0x26   : > { %s2835_s26 = scalar_lea.vmem %s3179_s15, 2048  ;;  %p2843_p2 = scmp.lt.s32.totalorder %s3179_s15, %s3179_s15 }
  0x27   : > { %p2836_p11 = scmp.ne.s32.totalorder %s3179_s15, %s2835_s26  ;;  %p2844_p13 = scmp.lt.s32.totalorder %s2835_s26, %s2835_s26 }
  0x29   : > { %p2838_p8 = pnand %p2836_p11, %p2824_p0  ;;  %p2845_p3 = por %p2844_p13, %p2843_p2 }
  0x2b   : > { %p2839_p1 = pneg %p2838_p8 }
  0x2d   : > { %p2846_p6 = pnand %p2845_p3, %p2839_p1 }
  0x2f   : > { %2849 = shalt.err (!%p2846_p6)
}
  0x30   : > { %s3074_s14 = smov 64   ;;  %s3075_s17 = smov 4  }
  0x31   : > { %2625 = dma.hbm_to_vmem [thread:$0]  (!%p3186_p12), %s3711_s1, 2048, %s3179_s15, [#allocation18], %s3074_s14, %s3074_s14, %s3075_s17  }
  0x32   : > { %s2850_s23 = scalar_lea.hbm %s3692_s3, 2048 }
  0x33   : > { %p2851_p2 = scmp.ne.s32.totalorder %s3692_s3, %s2850_s23  ;;  %p2857_p8 = scmp.lt.u32.totalorder %s2850_s23, %s3692_s3 }
  0x35   : > { %p2853_p1 = pnand %p2851_p2, %p2824_p0 }
  0x37   : > { %p2854_p6 = pneg %p2853_p1 }
  0x39   : > { %p2859_p11 = pnand %p2857_p8, %p2854_p6 }
  0x3b   : > { %2862 = shalt.err (!%p2859_p11)
}
  0x3c   : > { %s2863_s15 = scalar_lea.vmem %s3190_s18, 2048  ;;  %p2871_p13 = scmp.lt.s32.totalorder %s3190_s18, %s3190_s18 }
  0x3d   : > { %p2864_p5 = scmp.ne.s32.totalorder %s3190_s18, %s2863_s15  ;;  %p2872_p3 = scmp.lt.s32.totalorder %s2863_s15, %s2863_s15 }
  0x3f   : > { %p2866_p7 = pnand %p2864_p5, %p2824_p0  ;;  %p2873_p2 = por %p2872_p3, %p2871_p13 }
  0x41   : > { %p2867_p10 = pneg %p2866_p7 }
  0x43   : > { %p2874_p1 = pnand %p2873_p2, %p2867_p10 }
  0x45   : > { %2877 = shalt.err (!%p2874_p1)
}
  0x46   : > { %2628 = dma.hbm_to_vmem [thread:$0]  (!%p3186_p12), %s3692_s3, 2048, %s3190_s18, [#allocation18], %s3074_s14, %s3074_s14, %s3075_s17  }
  0x47   : > { %s3245_s20 = sadd.s32 1, %s3070_s30   ;;  %s39_s16 = sadd.s32 1, %s3066_s29 }
  0x48   : > { %s36_s21 = ssub.s32 %s3070_s30, %s3245_s20  ;;  %p46_p0 = scmp.ne.s32.totalorder %s3066_s29, %s3062_s28 }
  0x49   : > { %p37_p6 = scmp.eq.s32.totalorder %s36_s21, 0  ;;  %p47_p8 = scmp.eq.s32.totalorder %s3070_s30, 0 }
  0x4a   : > { %p3712_p11 = scmp.eq.s32.totalorder %s3153_s9, 1  ;;  %p2648_p7 = scmp.lt.s32.totalorder %s3070_s30, 2 }
  0x4b   : > { %s3261_s23 = scalar_select %p37_p6, %s3066_s29, %s39_s16  }
  0x4c   : > { %p3255_p5 = por %p3712_p11, %p46_p0  ;;  %p48_p10 = por %p47_p8, %p46_p0 }
  0x4d   : > { %s296_s24 = sand.u32 1, %s3066_s29   ;;  %s2423_s18 = sshll.u32 %s3070_s30, 9 }
  0x4e   : > { %s3713_s22 = scalar_select %p3255_p5, 1, 0 }
  0x4f   : > { %s2244_s25 = sshll.u32 %s296_s24, 5  ;;  %s3714_s0 = sld [smem:[#allocation31_spill]] }
  0x50   : > { %s300_s15 = scalar_lea.vmem [#allocation14], %s2244_s25  ;;  %p3272_p12 = pnand %p2648_p7, %p48_p10 }
  0x51   : > { %s307_s10 = sshll.u32 %s300_s15, 4  ;;  %s3276_s16 = scalar_lea.sflag [#allocation15], %s296_s24  ;;  %s3270_s10 = int_to_ptr.vmem [resolvable:$true] %s307_s10 }
  0x52   : > { %p2880_p3 = pneg %p3272_p12 }
  0x55   : > { %s3268_s26 = scalar_lea.hbm %s3714_s0, %s2423_s18  ;;  %s2883_s14 = scalar_lea.hbm %s3714_s0, 1024 }
  0x56   : > { %s2878_s21 = scalar_lea.hbm %s3268_s26, 512  ;;  %p2884_p0 = scmp.lt.u32.totalorder %s3268_s26, %s3714_s0 }
  0x57   : > { %p2879_p13 = scmp.ne.s32.totalorder %s3268_s26, %s2878_s21  ;;  %p2885_p6 = scmp.lt.u32.totalorder %s2883_s14, %s2878_s21 }
  0x58   : > { %p2887_p11 = scmp.lt.u32.totalorder %s2878_s21, %s3268_s26 }
  0x59   : > { %p2881_p2 = pnand %p2880_p3, %p2879_p13  ;;  %p2886_p8 = por %p2885_p6, %p2884_p0 }
  0x5b   : > { %p2882_p1 = pneg %p2881_p2  ;;  %p2888_p7 = por %p2887_p11, %p2886_p8 }
  0x5d   : > { %p2889_p10 = pnand %p2888_p7, %p2882_p1 }
  0x5f   : > { %2892 = shalt.err (!%p2889_p10)
}
  0x60   : > { %s2893_s24 = scalar_lea.vmem %s3270_s10, 512  ;;  %s3076_s25 = smov [#allocation14]  }
  0x61   : > { %p2894_p13 = scmp.ne.s32.totalorder %s3270_s10, %s2893_s24  ;;  %s2898_s18 = sshll.u32 %s3076_s25, 4  ;;  %s2899_s18 = int_to_ptr.vmem [resolvable:$false] %s2898_s18 }
  0x62   : > { %s2900_s17 = scalar_lea.vmem %s2899_s18, 1024  ;;  %p2901_p4 = scmp.lt.s32.totalorder %s3270_s10, %s2899_s18 }
  0x63   : > { %p2896_p2 = pnand %p2894_p13, %p2880_p3  ;;  %p2902_p0 = scmp.lt.s32.totalorder %s2900_s17, %s2893_s24 }
  0x65   : > { %p2897_p5 = pneg %p2896_p2  ;;  %p2903_p6 = por %p2902_p0, %p2901_p4 }
  0x67   : > { %p2904_p8 = pnand %p2903_p6, %p2897_p5 }
  0x69   : > { %2907 = shalt.err (!%p2904_p8)
}
  0x6a   : > { %s3077_s21 = smov 128   ;;  %s3078_s14 = smov 8  }
  0x6b   : > { %2632 = dma.hbm_to_vmem [thread:$0]  (!%p3272_p12), %s3268_s26, 512, %s3270_s10, %s3276_s16, %s3077_s21, %s3077_s21, %s3078_s14  }
  0x6c   : > { %319 = sbr.rel (%p3175_p9) target bundleno = 883 (0x373), region = 40  ;;  %s3307_s15 = sand.u32 (!%p3175_p9), 1, %s3062_s28  }
  0x6d   : > { %s2248_s24 = sshll.u32 (!%p3175_p9), %s3307_s15, 5  ;;  %s322_s25 = scalar_lea.sflag (!%p3175_p9), [#allocation15], %s3307_s15 }
  0x6e   : > { %s3311_s18 = scalar_lea.vmem (!%p3175_p9), [#allocation14], %s2248_s24  ;;  %p3716_p4 = scmp.ne.s32.totalorder (!%p3175_p9), %s3707_s11, 0 }
  0x73   : > { %3037 = dma.done.wait (%p3716_p4), %s322_s25, 512  }
  0x74   : > { %3039 = vsyncadd (%p3716_p4), %s322_s25, 4294966784  ;;  %p3717_p5 = scmp.eq.s32.totalorder %s3153_s9, 0 }
  0x76   : > { %3041 = dma.done.wait (%p3717_p5), [#allocation18], 4096   ;;  %p3718_p9 = pmov %p3717_p5 }
  0x77   : > { %s3321_s13 = scalar_lea.vmem [#allocation20], %s2248_s24  ;;  %s3323_s26 = scalar_lea.vmem [#allocation21], %s2248_s24 }
  0x78   : > { %3043 = vsyncadd (%p3718_p9), [#allocation18], 4294963200  ;;  %s3325_s10 = scalar_lea.vmem [#allocation23], %s2248_s24  ;;  %s3327_s19 = scalar_lea.vmem [#allocation24], %s2248_s24 }
  0x79   : > { %p3719_p12 = scmp.ne.s32.totalorder %s3153_s9, 0 }
  0x7a   : > { %v3079_v0 = vmov (!%p3719_p12), 0.0  }
  0x7b   : > { %390 = sbr.rel (%p3719_p12) target bundleno = 130 (0x82), region = 56  ;;  %391 = vst [vmem:[#allocation2] sm:$0xff] (!%p3719_p12), %v3079_v0  ;;  %392 = vst [vmem:[#allocation3] sm:$0xff] (!%p3719_p12), %v3079_v0 }
  0x7c   : > { %393 = vst [vmem:[#allocation4] sm:$0xff] (!%p3719_p12), %v3079_v0  ;;  %394 = vst [vmem:[#allocation5] sm:$0xff] (!%p3719_p12), %v3079_v0 }
  0x7d   : > { %395 = vst [vmem:[#allocation6] sm:$0xff] (!%p3719_p12), %v3079_v0  ;;  %396 = vst [vmem:[#allocation7] sm:$0xff] (!%p3719_p12), %v3079_v0 }
  0x7e   : > { %397 = vst [vmem:[#allocation8] sm:$0xff] (!%p3719_p12), %v3079_v0  ;;  %398 = vst [vmem:[#allocation9] sm:$0xff] (!%p3719_p12), %v3079_v0 }
  0x7f   : > { %399 = vst [vmem:[#allocation10] sm:$0xff] (!%p3719_p12), %v3079_v0  ;;  %400 = vst [vmem:[#allocation11] sm:$0xff] (!%p3719_p12), %v3079_v0 }
  0x80   : > { %401 = vst [vmem:[#allocation12] sm:$0xff] (!%p3719_p12), %v3079_v0  ;;  %402 = vst [vmem:[#allocation13] sm:$0xff] (!%p3719_p12), %v3079_v0 }
  0x82 PF: > { %v2694_v1 = vld [vmem:[#allocation17 + $0x40] sm:$0xff]   ;;  %v2696_v3 = vld [vmem:[#allocation17 + $0x48] sm:$0xff]   ;;  %v2698_v5 = vld [vmem:[#allocation17 + $0x50] sm:$0xff]   ;;  %s3720_s2 = sld [smem:[#allocation33_spill]]  ;;  %s1982_s14 = sand.u32 1, %s3153_s9  }
  0x83   : > { %v2695_v2 = vld [vmem:[#allocation17] sm:$0xff]   ;;  %2428 = vmatprep.subr.bf16.mxu0 %v2694_v1  ;;  %v2697_v4 = vld [vmem:[#allocation17 + $0x8] sm:$0xff]   ;;  %v2699_v6 = vld [vmem:[#allocation17 + $0x10] sm:$0xff]   ;;  %s3520_s24 = sshll.u32 %s3153_s9, 9  ;;  %s2022_s16 = sshll.u32 %s3323_s26, 4  ;;  %s3529_s16 = int_to_ptr.vmem [resolvable:$true] %s2022_s16 }
  0x84   : > { %2429 = vmatpush3.bf16.msra.mxu0 %v2695_v2  ;;  %v2700_v7 = vld [vmem:[#allocation17 + $0x58] sm:$0xff]   ;;  %v2702_v9 = vld [vmem:[#allocation17 + $0x60] sm:$0xff]   ;;  %v2704_v11 = vld [vmem:[#allocation17 + $0x68] sm:$0xff]   ;;  %s3526_s11 = scalar_lea.hbm %s3695_s6, %s3520_s24  ;;  %s3535_s0 = scalar_lea.hbm %s3694_s5, %s3520_s24 }
  0x85   : > { %2430 = vmatprep.subr.bf16.mxu0 %v2696_v3  ;;  %v2701_v8 = vld [vmem:[#allocation17 + $0x18] sm:$0xff]   ;;  %v2703_v10 = vld [vmem:[#allocation17 + $0x20] sm:$0xff]   ;;  %v3331_v13 = vld [vmem:[#allocation7] sm:$0xff]  ;;  %s3537_s9 = scalar_lea.sflag [#allocation22], %s1982_s14  ;;  %s2908_s1 = scalar_lea.vmem %s3529_s16, 512 }
  0x86   : > { %v407_v12 = vld [vmem:[#allocation6] sm:$0xff]  ;;  %v2705_v14 = vld [vmem:[#allocation17 + $0x28] sm:$0xff]   ;;  %v442_v16 = vmul.f32 9.999998, %v3331_v13  ;;  %v2706_v23 = vld [vmem:[#allocation17 + $0x70] sm:$0xff]   ;;  %p2909_p3 = scmp.ne.s32.totalorder %s3529_s16, %s2908_s1  ;;  %p3721_p1 = scmp.ne.s32.totalorder %s3713_s22, 0 }
  0x87   : > { %v441_v15 = vmul.f32 0.9, %v407_v12  ;;  %v2710_v17 = vld [vmem:[#allocation19 + $0x40] sm:$0xff]   ;;  %v404_v20 = vld [vmem:[#allocation3] sm:$0xff]  ;;  %v2707_v26 = vld [vmem:[#allocation17 + $0x30] sm:$0xff]   ;;  %s3081_s25 = smov [#allocation21]  }
  0x88   : > { %2431 = vmatpush3.bf16.msra.mxu0 %v2697_v4  ;;  %v403_v18 = vld [vmem:[#allocation2] sm:$0xff]  ;;  %v2292_v22 = vld [vmem:[%s3311_s18 + $0x8] sm:$0xff]  ;;  %2450 = vmatprep.subr.bf16.mxu1 %v2710_v17  ;;  %v430_v24 = vmul.f32 0.85, %v404_v20  ;;  %v434_v29 = vmul.f32 9.999998, %v404_v20  ;;  %p2910_p11 = pnand %p2909_p3, %p3721_p1 }
  0x89   : > { %2432 = vmatprep.subr.bf16.mxu0 %v2698_v5  ;;  %v3334_v19 = vadd.f32 %v442_v16, %v441_v15  ;;  %v429_v21 = vld [vmem:[%s3311_s18] sm:$0xff]  ;;  %v433_v28 = vmul.f32 0.9, %v403_v18  ;;  %v813_v31 = vmul.f32 6.666668, %v2292_v22  ;;  %v2331_v32 = vld [vmem:[%s3311_s18 + $0x10] sm:$0xff] }
  0x8a   : > { %v431_v25 = vmul.f32 6.666668, %v429_v21  ;;  %v2370_v33 = vld [vmem:[%s3311_s18 + $0x18] sm:$0xff]  ;;  %v2711_v34 = vld [vmem:[#allocation19] sm:$0xff]   ;;  %v1198_v38 = vmul.f32 6.666668, %v2331_v32  ;;  %p2911_p7 = pneg %p2910_p11 }
  0x8b   : > { %v445_v27 = vpack.c.bf16 %v3334_v19, %v3334_v19  ;;  %v2708_v35 = vld [vmem:[#allocation17 + $0x78] sm:$0xff]   ;;  %2451 = vmatpush3.bf16.msra.mxu1 %v2711_v34  ;;  %v3345_v39 = vadd.f32 %v434_v29, %v433_v28  ;;  %v1583_v41 = vmul.f32 6.666668, %v2370_v33  ;;  %v2714_v42 = vld [vmem:[#allocation19 + $0x48] sm:$0xff]   ;;  %v2712_v44 = vld [vmem:[#allocation17 + $0x40] sm:$0xff]   ;;  %s2912_s18 = sshll.u32 %s3081_s25, 4  ;;  %s2913_s18 = int_to_ptr.vmem [resolvable:$false] %s2912_s18 }
  0x8c   : > { %2433 = vmatpush3.bf16.msra.mxu0 %v2699_v6  ;;  %v3340_v30 = vadd.f32 %v431_v25, %v430_v24  ;;  %v2709_v37 = vld [vmem:[#allocation17 + $0x38] sm:$0xff]   ;;  %v2715_v45 = vld [vmem:[#allocation19 + $0x8] sm:$0xff]   ;;  %2452 = vmatprep.subr.bf16.mxu1 %v2714_v42  ;;  %v2713_v48 = vld [vmem:[#allocation17] sm:$0xff]   ;;  %v822_v28 = vmul.f32 0.9, %v3334_v19  ;;  %p2915_p10 = scmp.lt.s32.totalorder %s3529_s16, %s2913_s18 }
  0x8d   : > { %2434 = vmatprep.subr.bf16.mxu0 %v2700_v7  ;;  %606 = vmatprep.mubr.bf16.mxu0 %v445_v27  ;;  %v444_v46 = vpack.c.bf16 %v3345_v39, %v3345_v39  ;;  %v2718_v49 = vld [vmem:[#allocation19 + $0x50] sm:$0xff]   ;;  %v2716_v51 = vld [vmem:[#allocation17 + $0x48] sm:$0xff]   ;;  %v2722_v56 = vld [vmem:[#allocation19 + $0x58] sm:$0xff]   ;;  %v815_v18 = vmul.f32 0.9, %v3345_v39 }
  0x8e   : > { %v812_v36 = vmul.f32 0.85, %v3340_v30  ;;  %v2719_v52 = vld [vmem:[#allocation19 + $0x10] sm:$0xff]   ;;  %v2717_v53 = vld [vmem:[#allocation17 + $0x8] sm:$0xff]   ;;  %v2723_v57 = vld [vmem:[#allocation19 + $0x18] sm:$0xff]  }
  0x8f   : > { %2453 = vmatpush3.bf16.msra.mxu1 %v2715_v45  ;;  %v2720_v55 = vld [vmem:[#allocation17 + $0x50] sm:$0xff]   ;;  %v2724_v59 = vld [vmem:[#allocation17 + $0x58] sm:$0xff]   ;;  %v2726_v60 = vld [vmem:[#allocation19 + $0x60] sm:$0xff]  }
  0x90   : > { %2435 = vmatpush3.bf16.msra.mxu0 %v2701_v8  ;;  %v3347_v40 = vadd.f32 %v813_v31, %v812_v36  ;;  %2454 = vmatprep.subr.bf16.mxu1 %v2718_v49  ;;  %v2721_v58 = vld [vmem:[#allocation17 + $0x10] sm:$0xff]   ;;  %v2727_v61 = vld [vmem:[#allocation19 + $0x20] sm:$0xff]   ;;  %v2725_v62 = vld [vmem:[#allocation17 + $0x18] sm:$0xff]  }
  0x91   : > { %2436 = vmatprep.subr.bf16.mxu0 %v2702_v9  ;;  %v2728_v63 = vld [vmem:[#allocation17 + $0x60] sm:$0xff]   ;;  %v2730_v0 = vld [vmem:[#allocation19 + $0x68] sm:$0xff]   ;;  %v2734_v4 = vld [vmem:[#allocation19 + $0x70] sm:$0xff]  }
  0x92   : > { %v1197_v43 = vmul.f32 0.85, %v3347_v40  ;;  %v2731_v1 = vld [vmem:[#allocation19 + $0x28] sm:$0xff]   ;;  %v2729_v2 = vld [vmem:[#allocation17 + $0x20] sm:$0xff]   ;;  %v2735_v5 = vld [vmem:[#allocation19 + $0x30] sm:$0xff]  }
  0x93   : > { %2455 = vmatpush3.bf16.msra.mxu1 %v2719_v52  ;;  %v2732_v3 = vld [vmem:[#allocation17 + $0x68] sm:$0xff]   ;;  %v2736_v7 = vld [vmem:[#allocation17 + $0x70] sm:$0xff]   ;;  %v2738_v8 = vld [vmem:[#allocation19 + $0x78] sm:$0xff]  }
  0x94   : > { %2437 = vmatpush3.bf16.msra.mxu0 %v2703_v10  ;;  %v3352_v47 = vadd.f32 %v1198_v38, %v1197_v43  ;;  %2456 = vmatprep.subr.bf16.mxu1 %v2722_v56  ;;  %v2733_v6 = vld [vmem:[#allocation17 + $0x28] sm:$0xff]   ;;  %v2739_v9 = vld [vmem:[#allocation19 + $0x38] sm:$0xff]   ;;  %v438_v10 = vmul.f32 0.85, %v3331_v13  ;;  %v409_v20 = vld [vmem:[#allocation8] sm:$0xff] }
  0x95   : > { %2438 = vmatprep.subr.bf16.mxu0 %v2704_v11  ;;  %v413_v11 = vld [vmem:[#allocation12] sm:$0xff]  ;;  %v3356_v12 = vld [vmem:[#allocation13] sm:$0xff]  ;;  %v623_v24 = vmul.f32 0.9, %v409_v20  ;;  %v2742_v32 = vld [vmem:[#allocation19 + $0x40] sm:$0xff]  }
  0x96   : > { %v1582_v50 = vmul.f32 0.85, %v3352_v47  ;;  %v2740_v15 = vld [vmem:[#allocation17 + $0x78] sm:$0xff]   ;;  %v631_v16 = vmul.f32 0.9, %v413_v11  ;;  %v2743_v33 = vld [vmem:[#allocation19] sm:$0xff]  }
  0x97   : > { %2457 = vmatpush3.bf16.msra.mxu1 %v2723_v57  ;;  %v632_v17 = vmul.f32 9.999998, %v3356_v12  ;;  %v3360_v21 = vld [vmem:[#allocation9] sm:$0xff]  ;;  %v2744_v36 = vld [vmem:[#allocation17 + $0x40] sm:$0xff]   ;;  %v2747_v39 = vld [vmem:[#allocation19 + $0x8] sm:$0xff]  }
  0x98   : > { %2439 = vmatpush3.bf16.msra.mxu0 %v2705_v14  ;;  %v1584_v54 = vadd.f32 %v1583_v41, %v1582_v50  ;;  %2458 = vmatprep.subr.bf16.mxu1 %v2726_v60  ;;  %v2737_v14 = vld [vmem:[#allocation17 + $0x30] sm:$0xff]   ;;  %v3362_v22 = vld [vmem:[#allocation5] sm:$0xff]  ;;  %v624_v25 = vmul.f32 9.999998, %v3360_v21  ;;  %v2745_v42 = vld [vmem:[#allocation17] sm:$0xff]  }
  0x99   : > { %2440 = vmatprep.subr.bf16.mxu0 %v2706_v23  ;;  %v2741_v23 = vld [vmem:[#allocation17 + $0x38] sm:$0xff]   ;;  %v3364_v13 = vadd.f32 %v632_v17, %v631_v16  ;;  %v439_v27 = vmul.f32 6.666668, %v3362_v22  ;;  %v2750_v45 = vld [vmem:[#allocation19 + $0x50] sm:$0xff]   ;;  %v2759_v56 = vld [vmem:[#allocation19 + $0x20] sm:$0xff]  }
  0x9a   : > { %1966 = vst [vmem:[#allocation3] sm:$0xff] %v1584_v54  ;;  %v3372_v31 = vadd.f32 %v624_v25, %v623_v24  ;;  %v2752_v49 = vld [vmem:[#allocation17 + $0x50] sm:$0xff]   ;;  %v2755_v52 = vld [vmem:[#allocation19 + $0x18] sm:$0xff]   ;;  %v2760_v57 = vld [vmem:[#allocation17 + $0x60] sm:$0xff]   ;;  %v628_v60 = vmul.f32 0.85, %v3356_v12 }
  0x9b   : > { %2459 = vmatpush3.bf16.msra.mxu1 %v2727_v61  ;;  %v635_v29 = vpack.c.bf16 %v3364_v13, %v3364_v13  ;;  %v3374_v34 = vadd.f32 %v439_v27, %v438_v10  ;;  %v2753_v50 = vld [vmem:[#allocation17 + $0x10] sm:$0xff]   ;;  %v2757_v54 = vld [vmem:[#allocation17 + $0x18] sm:$0xff]   ;;  %v2763_v61 = vld [vmem:[#allocation19 + $0x28] sm:$0xff]   ;;  %v1201_v20 = vmul.f32 9.999998, %v3347_v40 }
  0x9c   : > { %2441 = vmatpush3.bf16.msra.mxu0 %v2707_v26  ;;  %2460 = vmatprep.subr.bf16.mxu1 %v2730_v0  ;;  %v816_v26 = vmul.f32 9.999998, %v3340_v30  ;;  %v3388_v0 = vld [vmem:[#allocation11] sm:$0xff]  ;;  %v2771_v10 = vld [vmem:[#allocation19 + $0x38] sm:$0xff]   ;;  %v2774_v16 = vld [vmem:[#allocation19 + $0x40] sm:$0xff]  }
  0x9d   : > { %2442 = vmatprep.subr.bf16.mxu0 %v2708_v35  ;;  %796 = vmatprep.mubr.bf16.mxu1 %v635_v29  ;;  %v634_v35 = vpack.c.bf16 %v3372_v31, %v3372_v31  ;;  %v823_v19 = vmul.f32 9.999998, %v3374_v34  ;;  %v2773_v12 = vld [vmem:[#allocation17 + $0x38] sm:$0xff]   ;;  %v2776_v17 = vld [vmem:[#allocation17 + $0x40] sm:$0xff]   ;;  %v1586_v24 = vmul.f32 9.999998, %v3352_v47 }
  0x9e   : > { %v3378_v30 = vadd.f32 %v816_v26, %v815_v18  ;;  %v405_v26 = vld [vmem:[#allocation4] sm:$0xff]  ;;  %v3408_v29 = vld [vmem:[%s3720_s2] ss:$0 sm:$0xff] }
  0x9f   : > { %2461 = vmatpush3.bf16.msra.mxu1 %v2731_v1  ;;  %v3381_v38 = vadd.f32 %v823_v19, %v822_v28  ;;  %v2766_v1 = vld [vmem:[#allocation19 + $0x70] sm:$0xff]   ;;  %v436_v27 = vmul.f32 0.65, %v405_v26  ;;  %v620_v19 = vmul.f32 0.85, %v3360_v21 }
  0xa0   : > { %2443 = vmatpush3.bf16.msra.mxu0 %v2709_v37  ;;  %2462 = vmatprep.subr.bf16.mxu1 %v2734_v4  ;;  %v2746_v37 = vld [vmem:[#allocation19 + $0x48] sm:$0xff]   ;;  %v825_v41 = vpack.c.bf16 %v3378_v30, %v3378_v30  ;;  %v629_v4 = vmul.f32 6.666668, %v3388_v0  ;;  %v1200_v18 = vmul.f32 0.9, %v3378_v30 }
  0xa1   : > { %2472 = vmatprep.subr.bf16.mxu0 %v2712_v44  ;;  %v826_v43 = vpack.c.bf16 %v3381_v38, %v3381_v38  ;;  %v2748_v44 = vld [vmem:[#allocation17 + $0x48] sm:$0xff]   ;;  %v3411_v40 = vsub.f32 %v436_v27, %v3362_v22  ;;  %v1207_v21 = vmul.f32 0.9, %v3381_v38 }
  0xa2   : > { %v2779_v38 = vld [vmem:[#allocation19 + $0x8] sm:$0xff]  }
  0xa3   : > { %607 = vmatmul.mubr.bf16.vlgmr.msra.gmra.mrb[0].mxu0 %v444_v46  ;;  %2463 = vmatpush3.bf16.msra.mxu1 %v2735_v5  ;;  %v2751_v46 = vld [vmem:[#allocation19 + $0x10] sm:$0xff]   ;;  %v2795_v27 = vld [vmem:[#allocation19 + $0x28] sm:$0xff]  }
  0xa4   : > { %2473 = vmatpush3.bf16.msra.mxu0 %v2713_v48  ;;  %2464 = vmatprep.subr.bf16.mxu1 %v2738_v8  ;;  %v2749_v48 = vld [vmem:[#allocation17 + $0x8] sm:$0xff]   ;;  %v2769_v5 = vld [vmem:[#allocation17 + $0x30] sm:$0xff]   ;;  %v2772_v8 = vld [vmem:[#allocation17 + $0x78] sm:$0xff]  }
  0xa5   : > { %2474 = vmatprep.subr.bf16.mxu0 %v2716_v51  ;;  %987 = vmatprep.mubr.bf16.mxu0 %v826_v43  ;;  %v2754_v51 = vld [vmem:[#allocation19 + $0x58] sm:$0xff]  }
  0xa7   : > { %2465 = vmatpush3.bf16.msra.mxu1 %v2739_v9  ;;  %v3392_v9 = vadd.f32 %v629_v4, %v628_v60  ;;  %v2785_v60 = vld [vmem:[#allocation17 + $0x10] sm:$0xff]  }
  0xa8   : > { %2475 = vmatpush3.bf16.msra.mxu0 %v2717_v53  ;;  %2494 = vmatprep.subr.bf16.mxu1 %v2742_v32  ;;  %v2756_v53 = vld [vmem:[#allocation17 + $0x58] sm:$0xff]  }
  0xa9   : > { %2476 = vmatprep.subr.bf16.mxu0 %v2720_v55  ;;  %v2758_v55 = vld [vmem:[#allocation19 + $0x60] sm:$0xff]   ;;  %v1015_v11 = vmul.f32 9.999998, %v3392_v9 }
  0xaa   : > { %797 = vmatmul.mubr.bf16.vlgmr.msra.gmra.mrb[0].mxu1 %v634_v35 }
  0xab   : > { %2495 = vmatpush3.bf16.msra.mxu1 %v2743_v33 }
  0xac   : > { %2477 = vmatpush3.bf16.msra.mxu0 %v2721_v58  ;;  %2496 = vmatprep.subr.bf16.mxu1 %v2746_v37  ;;  %v2761_v58 = vld [vmem:[#allocation17 + $0x20] sm:$0xff]   ;;  %v820_v37 = vmul.f32 0.85, %v3374_v34 }
  0xad   : > { %2478 = vmatprep.subr.bf16.mxu0 %v2724_v59  ;;  %v2762_v59 = vld [vmem:[#allocation19 + $0x68] sm:$0xff]  }
  0xaf   : > { %2497 = vmatpush3.bf16.msra.mxu1 %v2747_v39  ;;  %v3080_v39 = vmov 0.0  }
  0xb0   : > { %2479 = vmatpush3.bf16.msra.mxu0 %v2725_v62  ;;  %2498 = vmatprep.subr.bf16.mxu1 %v2750_v45  ;;  %v2764_v62 = vld [vmem:[#allocation17 + $0x68] sm:$0xff]  }
  0xb1   : > { %2480 = vmatprep.subr.bf16.mxu0 %v2728_v63  ;;  %v2765_v63 = vld [vmem:[#allocation17 + $0x28] sm:$0xff]  }
  0xb3   : > { %2499 = vmatpush3.bf16.msra.mxu1 %v2751_v46 }
  0xb4   : > { %2481 = vmatpush3.bf16.msra.mxu0 %v2729_v2  ;;  %2500 = vmatprep.subr.bf16.mxu1 %v2754_v51  ;;  %v2767_v2 = vld [vmem:[#allocation19 + $0x30] sm:$0xff]  }
  0xb5   : > { %2482 = vmatprep.subr.bf16.mxu0 %v2732_v3  ;;  %v2768_v3 = vld [vmem:[#allocation17 + $0x70] sm:$0xff]  }
  0xb7   : > { %2501 = vmatpush3.bf16.msra.mxu1 %v2755_v52  ;;  %v2777_v52 = vld [vmem:[#allocation17] sm:$0xff]  }
  0xb8   : > { %2483 = vmatpush3.bf16.msra.mxu0 %v2733_v6  ;;  %2502 = vmatprep.subr.bf16.mxu1 %v2758_v55  ;;  %v2770_v6 = vld [vmem:[#allocation19 + $0x78] sm:$0xff]   ;;  %v2781_v55 = vld [vmem:[#allocation17 + $0x8] sm:$0xff]  }
  0xb9   : > { %2484 = vmatprep.subr.bf16.mxu0 %v2736_v7  ;;  %v1014_v7 = vmul.f32 0.9, %v3364_v13 }
  0xbb   : > { %2503 = vmatpush3.bf16.msra.mxu1 %v2759_v56  ;;  %v2782_v56 = vld [vmem:[#allocation19 + $0x50] sm:$0xff]  }
  0xbc   : > { %2485 = vmatpush3.bf16.msra.mxu0 %v2737_v14  ;;  %2504 = vmatprep.subr.bf16.mxu1 %v2762_v59  ;;  %v3395_v14 = vadd.f32 %v1015_v11, %v1014_v7  ;;  %v2783_v59 = vld [vmem:[#allocation19 + $0x10] sm:$0xff]  }
  0xbd   : > { %2486 = vmatprep.subr.bf16.mxu0 %v2740_v15 }
  0xbe   : > { %v1018_v15 = vpack.c.bf16 %v3395_v14, %v3395_v14 }
  0xbf   : > { %2505 = vmatpush3.bf16.msra.mxu1 %v2763_v61  ;;  %v2786_v61 = vld [vmem:[#allocation19 + $0x58] sm:$0xff]  }
  0xc0   : > { %2487 = vmatpush3.bf16.msra.mxu0 %v2741_v23  ;;  %2506 = vmatprep.subr.bf16.mxu1 %v2766_v1  ;;  %v1202_v23 = vadd.f32 %v1201_v20, %v1200_v18  ;;  %v2794_v18 = vld [vmem:[#allocation19 + $0x68] sm:$0xff]  }
  0xc1   : > { %2516 = vmatprep.subr.bf16.mxu0 %v2744_v36  ;;  %1179 = vmatprep.mubr.bf16.mxu1 %v1018_v15 }
  0xc2   : > { %v1585_v13 = vmul.f32 0.9, %v1202_v23 }
  0xc3   : > { %988 = vmatmul.mubr.bf16.vlgmr.msra.gmra.mrb[4].mxu0 %v825_v41  ;;  %2507 = vmatpush3.bf16.msra.mxu1 %v2767_v2  ;;  %v2787_v2 = vld [vmem:[#allocation19 + $0x18] sm:$0xff]  }
  0xc4   : > { %2517 = vmatpush3.bf16.msra.mxu0 %v2745_v42  ;;  %2508 = vmatprep.subr.bf16.mxu1 %v2770_v6  ;;  %v3402_v25 = vadd.f32 %v1586_v24, %v1585_v13  ;;  %v1006_v42 = vmul.f32 0.9, %v3372_v31  ;;  %v2790_v6 = vld [vmem:[#allocation19 + $0x60] sm:$0xff]   ;;  %v2796_v13 = vld [vmem:[#allocation17 + $0x68] sm:$0xff]  }
  0xc5   : > { %2518 = vmatprep.subr.bf16.mxu0 %v2748_v44 }
  0xc6   : > { %1965 = vst [vmem:[#allocation2] sm:$0xff] %v3402_v25 }
  0xc7   : > { %2509 = vmatpush3.bf16.msra.mxu1 %v2771_v10  ;;  %v2792_v10 = vld [vmem:[#allocation17 + $0x60] sm:$0xff]  }
  0xc8   : > { %2519 = vmatpush3.bf16.msra.mxu0 %v2749_v48  ;;  %2538 = vmatprep.subr.bf16.mxu1 %v2774_v16  ;;  %v2791_v16 = vld [vmem:[#allocation19 + $0x20] sm:$0xff]  }
  0xc9   : > { %2520 = vmatprep.subr.bf16.mxu0 %v2752_v49  ;;  %v1210_v49 = vpack.c.bf16 %v1202_v23, %v1202_v23 }
  0xcc   : > { %2521 = vmatpush3.bf16.msra.mxu0 %v2753_v50  ;;  %v2775_v50 = vld [vmem:[#allocation19] sm:$0xff]  }
  0xcd   : > { %2522 = vmatprep.subr.bf16.mxu0 %v2756_v53  ;;  %v2778_v53 = vld [vmem:[#allocation19 + $0x48] sm:$0xff]  }
  0xd0   : > { %2523 = vmatpush3.bf16.msra.mxu0 %v2757_v54  ;;  %v2780_v54 = vld [vmem:[#allocation17 + $0x48] sm:$0xff]  }
  0xd1   : > { %2524 = vmatprep.subr.bf16.mxu0 %v2760_v57  ;;  %v2784_v57 = vld [vmem:[#allocation17 + $0x50] sm:$0xff]  }
  0xd4   : > { %2525 = vmatpush3.bf16.msra.mxu0 %v2761_v58  ;;  %v411_v58 = vld [vmem:[#allocation10] sm:$0xff] }
  0xd5   : > { %2526 = vmatprep.subr.bf16.mxu0 %v2764_v62  ;;  %v626_v62 = vmul.f32 0.65, %v411_v58 }
  0xd7   : > { %v3446_v7 = vsub.f32 %v626_v62, %v3388_v0  ;;  %v818_v0 = vmul.f32 0.65, %v3411_v40 }
  0xd8   : > { %2527 = vmatpush3.bf16.msra.mxu0 %v2765_v63  ;;  %v2788_v63 = vld [vmem:[#allocation17 + $0x58] sm:$0xff]  }
  0xd9   : > { %2528 = vmatprep.subr.bf16.mxu0 %v2768_v3  ;;  %v3443_v3 = vld [vmem:[%s3693_s4] ss:$0 sm:$0xff] }
  0xdc   : > { %2529 = vmatpush3.bf16.msra.mxu0 %v2769_v5  ;;  %v2789_v5 = vld [vmem:[#allocation17 + $0x18] sm:$0xff]  }
  0xdd   : > { %2530 = vmatprep.subr.bf16.mxu0 %v2772_v8 }
  0xe0   : > { %2531 = vmatpush3.bf16.msra.mxu0 %v2773_v12 }
  0xe1   : > { %2560 = vmatprep.subr.bf16.mxu0 %v2776_v17  ;;  %v2793_v17 = vld [vmem:[#allocation17 + $0x20] sm:$0xff]  }
 0x176   : > { %v2444_v28 = vpop.f32.mrb[0].mxu0 }
 0x177   : > { %v2445_v32 = vpop.f32.mrb[1].mxu0 }
 0x178   : > { %v2446_v33 = vadd.f32 %v2445_v32, %v2444_v28  ;;  %v2447_v47 = vpop.f32.mrb[2].mxu0  ;;  %v1011_v28 = vmul.f32 0.85, %v3392_v9  ;;  %v2800_v9 = vld [vmem:[#allocation17 + $0x70] sm:$0xff]  }
 0x179   : > { %v2448_v35 = vpop.f32.mrb[3].mxu0  ;;  %v2797_v47 = vld [vmem:[#allocation17 + $0x28] sm:$0xff]  }
 0x17a   : > { %v609_v30 = vadd.f32 %v2446_v33, %v3408_v29  ;;  %v2798_v35 = vld [vmem:[#allocation19 + $0x70] sm:$0xff]  }
 0x17c   : > { %v614_v36 = vadd.f32 %v609_v30, %v3411_v40 }
 0x17d   : > { %v2466_v1 = vpop.f32.mrb[0].mxu1 }
 0x17e   : > { %vm615_vm0 = vcmp.gt.f32.partialorder %v614_v36, 0.0  ;;  %619 = vst [vmem:[%s3323_s26] sm:$0xff] %v614_v36  ;;  %v2467_v4 = vpop.f32.mrb[1].mxu1 }
 0x17f   : > { %v3419_v41 = vsel %vm615_vm0, 1.0, %v3080_v39  ;;  %v2468_v8 = vadd.f32 %v2467_v4, %v2466_v1  ;;  %v2469_v11 = vpop.f32.mrb[2].mxu1  ;;  %v1595_v1 = vpack.c.bf16 %v3402_v25, %v3402_v25  ;;  %v1009_v25 = vmul.f32 0.65, %v3446_v7 }
 0x180   : > { %618 = vst [vmem:[%s3321_s13] sm:$0xff] %v3419_v41  ;;  %v621_v22 = vmul.f32 6.666668, %v3419_v41  ;;  %v2470_v12 = vpop.f32.mrb[3].mxu1  ;;  %v819_v36 = vsub.f32 %v818_v0, %v3419_v41  ;;  %v2804_v41 = vld [vmem:[#allocation17 + $0x78] sm:$0xff]  }
 0x181   : > { %v799_v15 = vadd.f32 %v2468_v8, %v3443_v3  ;;  %v2811_v8 = vld [vmem:[#allocation19 + $0x10] sm:$0xff]   ;;  %v2812_v11 = vld [vmem:[#allocation19 + $0x58] sm:$0xff]  }
 0x182   : > { %v3425_v43 = vadd.f32 %v621_v22, %v620_v19  ;;  %v3427_v44 = vadd.f32 %v820_v37, %v621_v22  ;;  %v2799_v22 = vld [vmem:[#allocation19 + $0x30] sm:$0xff]   ;;  %v2813_v12 = vld [vmem:[#allocation19 + $0x18] sm:$0xff]  }
 0x183   : > { %v804_v20 = vadd.f32 %v799_v15, %v3446_v7  ;;  %v2814_v15 = vld [vmem:[#allocation19 + $0x60] sm:$0xff]   ;;  %v2820_v0 = vld [vmem:[#allocation19 + $0x78] sm:$0xff]  }
 0x184   : > { %v1007_v45 = vmul.f32 9.999998, %v3425_v43  ;;  %v1208_v34 = vmul.f32 9.999998, %v3427_v44  ;;  %v2821_v7 = vld [vmem:[#allocation19 + $0x38] sm:$0xff]  }
 0x185   : > { %vm805_vm1 = vcmp.gt.f32.partialorder %v804_v20, 0.0  ;;  %809 = vst [vmem:[%s3327_s19] sm:$0xff] %v804_v20  ;;  %v2818_v20 = vld [vmem:[#allocation19 + $0x70] sm:$0xff]  }
 0x186   : > { %v3432_v46 = vadd.f32 %v1007_v45, %v1006_v42  ;;  %v3434_v48 = vadd.f32 %v1208_v34, %v1207_v21  ;;  %v3454_v33 = vsel %vm805_vm1, 1.0, %v3080_v39  ;;  %v1399_v21 = vmul.f32 0.9, %v3395_v14  ;;  %v2801_v45 = vld [vmem:[#allocation17 + $0x30] sm:$0xff]   ;;  %v2802_v34 = vld [vmem:[#allocation19 + $0x78] sm:$0xff]  }
 0x187   : > { %808 = vst [vmem:[%s3325_s10] sm:$0xff] %v3454_v33  ;;  %v1012_v30 = vmul.f32 6.666668, %v3454_v33 }
 0x188   : > { %v1017_v51 = vpack.c.bf16 %v3432_v46, %v3432_v46  ;;  %v1211_v31 = vpack.c.bf16 %v3434_v48, %v3434_v48 }
 0x189   : > { %v3461_v42 = vadd.f32 %v1012_v30, %v1011_v28 }
 0x18a   : > { %1180 = vmatmul.mubr.bf16.vlgmr.msra.gmra.mrb[4].mxu1 %v1017_v51  ;;  %1372 = vmatprep.mubr.bf16.mxu0 %v1211_v31  ;;  %v1003_v31 = vmul.f32 0.85, %v3425_v43 }
 0x18b   : > { %1373 = vmatmul.mubr.bf16.vlgmr.msra.gmra.mrb[8].mxu0 %v1210_v49  ;;  %2539 = vmatpush3.bf16.msra.mxu1 %v2775_v50  ;;  %v1400_v49 = vmul.f32 9.999998, %v3461_v42  ;;  %v1203_v50 = vmul.f32 0.65, %v819_v36 }
 0x18c   : > { %2561 = vmatpush3.bf16.msra.mxu0 %v2777_v52  ;;  %2540 = vmatprep.subr.bf16.mxu1 %v2778_v53  ;;  %v2803_v53 = vld [vmem:[#allocation19 + $0x38] sm:$0xff]  }
 0x18d   : > { %2562 = vmatprep.subr.bf16.mxu0 %v2780_v54  ;;  %v3469_v14 = vadd.f32 %v1400_v49, %v1399_v21  ;;  %v1205_v54 = vmul.f32 0.85, %v3427_v44 }
 0x18f   : > { %2541 = vmatpush3.bf16.msra.mxu1 %v2779_v38  ;;  %v1403_v43 = vpack.c.bf16 %v3469_v14, %v3469_v14 }
 0x190   : > { %2563 = vmatpush3.bf16.msra.mxu0 %v2781_v55  ;;  %2542 = vmatprep.subr.bf16.mxu1 %v2782_v56  ;;  %v2805_v55 = vld [vmem:[#allocation17 + $0x38] sm:$0xff]   ;;  %v2806_v56 = vld [vmem:[#allocation19 + $0x40] sm:$0xff]  }
 0x191   : > { %2564 = vmatprep.subr.bf16.mxu0 %v2784_v57  ;;  %1564 = vmatprep.mubr.bf16.mxu1 %v1403_v43 }
 0x193   : > { %2543 = vmatpush3.bf16.msra.mxu1 %v2783_v59  ;;  %v1391_v59 = vmul.f32 0.9, %v3432_v46 }
 0x194   : > { %2565 = vmatpush3.bf16.msra.mxu0 %v2785_v60  ;;  %2544 = vmatprep.subr.bf16.mxu1 %v2786_v61  ;;  %v1592_v60 = vmul.f32 0.9, %v3434_v48  ;;  %v2809_v48 = vld [vmem:[#allocation19 + $0x8] sm:$0xff]  }
 0x195   : > { %2566 = vmatprep.subr.bf16.mxu0 %v2788_v63 }
 0x196   : > { %v2488_v23 = vpop.f32.mrb[4].mxu0 }
 0x197   : > { %2545 = vmatpush3.bf16.msra.mxu1 %v2787_v2  ;;  %v2489_v24 = vpop.f32.mrb[5].mxu0  ;;  %v2807_v2 = vld [vmem:[#allocation19] sm:$0xff]  }
 0x198   : > { %2567 = vmatpush3.bf16.msra.mxu0 %v2789_v5  ;;  %2546 = vmatprep.subr.bf16.mxu1 %v2790_v6  ;;  %v2490_v26 = vadd.f32 %v2489_v24, %v2488_v23  ;;  %v2491_v32 = vpop.f32.mrb[6].mxu0  ;;  %v2808_v5 = vld [vmem:[#allocation19 + $0x48] sm:$0xff]   ;;  %v2810_v6 = vld [vmem:[#allocation19 + $0x50] sm:$0xff]  }
 0x199   : > { %2568 = vmatprep.subr.bf16.mxu0 %v2792_v10  ;;  %v2492_v40 = vpop.f32.mrb[7].mxu0  ;;  %v1010_v10 = vsub.f32 %v1009_v25, %v3454_v33  ;;  %v2819_v23 = vld [vmem:[#allocation19 + $0x30] sm:$0xff]  }
 0x19a   : > { %v990_v19 = vadd.f32 %v2490_v26, %v3408_v29 }
 0x19b   : > { %2547 = vmatpush3.bf16.msra.mxu1 %v2791_v16  ;;  %v2815_v16 = vld [vmem:[#allocation19 + $0x20] sm:$0xff]  }
 0x19c   : > { %2569 = vmatpush3.bf16.msra.mxu0 %v2793_v17  ;;  %2548 = vmatprep.subr.bf16.mxu1 %v2794_v18  ;;  %v995_v37 = vadd.f32 %v990_v19, %v819_v36  ;;  %v2816_v17 = vld [vmem:[#allocation19 + $0x68] sm:$0xff]  }
 0x19d   : > { %2570 = vmatprep.subr.bf16.mxu0 %v2796_v13  ;;  %v2817_v18 = vld [vmem:[#allocation19 + $0x28] sm:$0xff]  }
 0x19e   : > { %vm996_vm2 = vcmp.gt.f32.partialorder %v995_v37, 0.0  ;;  %2311 = vst [vmem:[%s3323_s26 + $0x8] sm:$0xff] %v995_v37  ;;  %v1394_v37 = vmul.f32 0.65, %v1010_v10 }
 0x19f   : > { %2549 = vmatpush3.bf16.msra.mxu1 %v2795_v27  ;;  %v2309_v51 = vsel %vm996_vm2, 1.0, %v3080_v39 }
 0x1a0   : > { %2571 = vmatpush3.bf16.msra.mxu0 %v2797_v47  ;;  %2550 = vmatprep.subr.bf16.mxu1 %v2798_v35  ;;  %2310 = vst [vmem:[%s3321_s13 + $0x8] sm:$0xff] %v2309_v51  ;;  %v1004_v52 = vmul.f32 6.666668, %v2309_v51  ;;  %v3472_v38 = vsub.f32 %v1203_v50, %v2309_v51 }
 0x1a1   : > { %2572 = vmatprep.subr.bf16.mxu0 %v2800_v9 }
 0x1a2   : > { %v3474_v57 = vadd.f32 %v1004_v52, %v1003_v31  ;;  %v3478_v58 = vadd.f32 %v1205_v54, %v1004_v52  ;;  %v1588_v21 = vmul.f32 0.65, %v3472_v38 }
 0x1a3   : > { %2551 = vmatpush3.bf16.msra.mxu1 %v2799_v22 }
 0x1a4   : > { %2573 = vmatpush3.bf16.msra.mxu0 %v2801_v45  ;;  %2552 = vmatprep.subr.bf16.mxu1 %v2802_v34  ;;  %v1392_v44 = vmul.f32 9.999998, %v3474_v57  ;;  %v1593_v61 = vmul.f32 9.999998, %v3478_v58  ;;  %v1590_v50 = vmul.f32 0.85, %v3478_v58 }
 0x1a5   : > { %2574 = vmatprep.subr.bf16.mxu0 %v2804_v41  ;;  %v1396_v41 = vmul.f32 0.85, %v3461_v42  ;;  %v1388_v51 = vmul.f32 0.85, %v3474_v57 }
 0x1a6   : > { %v3484_v62 = vadd.f32 %v1392_v44, %v1391_v59  ;;  %v1594_v63 = vadd.f32 %v1593_v61, %v1592_v60 }
 0x1a7   : > { %2553 = vmatpush3.bf16.msra.mxu1 %v2803_v53 }
 0x1a8   : > { %2575 = vmatpush3.bf16.msra.mxu0 %v2805_v55  ;;  %2582 = vmatprep.subr.bf16.mxu1 %v2806_v56  ;;  %v1402_v46 = vpack.c.bf16 %v3484_v62, %v3484_v62  ;;  %v1596_v4 = vpack.c.bf16 %v1594_v63, %v1594_v63  ;;  %1969 = vst [vmem:[#allocation6] sm:$0xff] %v1594_v63  ;;  %v1776_v43 = vmul.f32 0.9, %v3484_v62 }
 0x1aa   : > { %1565 = vmatmul.mubr.bf16.vlgmr.msra.gmra.mrb[8].mxu1 %v1402_v46  ;;  %1757 = vmatprep.mubr.bf16.mxu0 %v1596_v4 }
 0x1ab   : > { %1758 = vmatmul.mubr.bf16.vlgmr.msra.gmra.mrb[12].mxu0 %v1595_v1  ;;  %2583 = vmatpush3.bf16.msra.mxu1 %v2807_v2 }
 0x1ac   : > { %2584 = vmatprep.subr.bf16.mxu1 %v2808_v5 }
 0x1af   : > { %2585 = vmatpush3.bf16.msra.mxu1 %v2809_v48 }
 0x1b0   : > { %2586 = vmatprep.subr.bf16.mxu1 %v2810_v6 }
 0x1b3   : > { %2587 = vmatpush3.bf16.msra.mxu1 %v2811_v8 }
 0x1b4   : > { %2588 = vmatprep.subr.bf16.mxu1 %v2812_v11 }
 0x1b7   : > { %2589 = vmatpush3.bf16.msra.mxu1 %v2813_v12 }
 0x1b8   : > { %2590 = vmatprep.subr.bf16.mxu1 %v2814_v15 }
 0x1bb   : > { %2591 = vmatpush3.bf16.msra.mxu1 %v2815_v16 }
 0x1bc   : > { %2592 = vmatprep.subr.bf16.mxu1 %v2816_v17 }
 0x1bf   : > { %2593 = vmatpush3.bf16.msra.mxu1 %v2817_v18 }
 0x1c0   : > { %2594 = vmatprep.subr.bf16.mxu1 %v2818_v20 }
 0x1c3   : > { %2595 = vmatpush3.bf16.msra.mxu1 %v2819_v23 }
 0x1c4   : > { %2596 = vmatprep.subr.bf16.mxu1 %v2820_v0 }
 0x1c7   : > { %2597 = vmatpush3.bf16.msra.mxu1 %v2821_v7 }
 0x25d   : > { %v2510_v13 = vpop.f32.mrb[4].mxu1 }
 0x25e   : > { %v2511_v24 = vpop.f32.mrb[5].mxu1  ;;  %v2532_v26 = vpop.f32.mrb[8].mxu0 }
 0x25f   : > { %v2512_v27 = vadd.f32 %v2511_v24, %v2510_v13  ;;  %v2513_v28 = vpop.f32.mrb[6].mxu1  ;;  %v2533_v32 = vpop.f32.mrb[9].mxu0 }
 0x260   : > { %v2534_v33 = vadd.f32 %v2533_v32, %v2532_v26  ;;  %v2514_v47 = vpop.f32.mrb[7].mxu1  ;;  %v2535_v35 = vpop.f32.mrb[10].mxu0 }
 0x261   : > { %v1182_v40 = vadd.f32 %v2512_v27, %v3443_v3  ;;  %v2536_v30 = vpop.f32.mrb[11].mxu0 }
 0x262   : > { %v1375_v36 = vadd.f32 %v2534_v33, %v3408_v29 }
 0x263   : > { %v1187_v19 = vadd.f32 %v1182_v40, %v1010_v10 }
 0x264   : > { %v1380_v9 = vadd.f32 %v1375_v36, %v3472_v38  ;;  %v1784_v38 = vmul.f32 0.9, %v3469_v14 }
 0x265   : > { %vm1188_vm3 = vcmp.gt.f32.partialorder %v1187_v19, 0.0  ;;  %2330 = vst [vmem:[%s3327_s19 + $0x8] sm:$0xff] %v1187_v19 }
 0x266   : > { %v2328_v22 = vsel %vm1188_vm3, 1.0, %v3080_v39  ;;  %vm1381_vm4 = vcmp.gt.f32.partialorder %v1380_v9, 0.0  ;;  %2350 = vst [vmem:[%s3323_s26 + $0x10] sm:$0xff] %v1380_v9 }
 0x267   : > { %2329 = vst [vmem:[%s3325_s10 + $0x8] sm:$0xff] %v2328_v22  ;;  %v1397_v45 = vmul.f32 6.666668, %v2328_v22  ;;  %v2348_v34 = vsel %vm1381_vm4, 1.0, %v3080_v39  ;;  %v1395_v49 = vsub.f32 %v1394_v37, %v2328_v22 }
 0x268   : > { %2349 = vst [vmem:[%s3321_s13 + $0x10] sm:$0xff] %v2348_v34  ;;  %v1389_v31 = vmul.f32 6.666668, %v2348_v34  ;;  %v1589_v52 = vsub.f32 %v1588_v21, %v2348_v34 }
 0x269   : > { %v1398_v53 = vadd.f32 %v1397_v45, %v1396_v41  ;;  %v1779_v10 = vmul.f32 0.65, %v1395_v49 }
 0x26a   : > { %v1390_v54 = vadd.f32 %v1389_v31, %v1388_v51  ;;  %v1591_v55 = vadd.f32 %v1590_v50, %v1389_v31  ;;  %1967 = vst [vmem:[#allocation4] sm:$0xff] %v1589_v52 }
 0x26b   : > { %v1785_v56 = vmul.f32 9.999998, %v1398_v53  ;;  %v1781_v12 = vmul.f32 0.85, %v1398_v53 }
 0x26c   : > { %1970 = vst [vmem:[#allocation7] sm:$0xff] %v1591_v55  ;;  %v1777_v59 = vmul.f32 9.999998, %v1390_v54 }
 0x26d   : > { %v1786_v42 = vadd.f32 %v1785_v56, %v1784_v38 }
 0x26e   : > { %v1778_v44 = vadd.f32 %v1777_v59, %v1776_v43 }
 0x26f   : > { %v1788_v60 = vpack.c.bf16 %v1786_v42, %v1786_v42  ;;  %1975 = vst [vmem:[#allocation12] sm:$0xff] %v1786_v42 }
 0x270   : > { %v1787_v58 = vpack.c.bf16 %v1778_v44, %v1778_v44  ;;  %1971 = vst [vmem:[#allocation8] sm:$0xff] %v1778_v44 }
 0x271   : > { %1949 = vmatprep.mubr.bf16.mxu1 %v1788_v60 }
 0x272   : > { %1950 = vmatmul.mubr.bf16.vlgmr.msra.gmra.mrb[12].mxu1 %v1787_v58 }
 0x27d   : > { %v2554_v57 = vpop.f32.mrb[8].mxu1 }
 0x27e   : > { %v2555_v61 = vpop.f32.mrb[9].mxu1  ;;  %v2576_v63 = vpop.f32.mrb[12].mxu0 }
 0x27f   : > { %v2556_v1 = vadd.f32 %v2555_v61, %v2554_v57  ;;  %v2557_v14 = vpop.f32.mrb[10].mxu1  ;;  %v2577_v2 = vpop.f32.mrb[13].mxu0 }
 0x280   : > { %v2578_v46 = vadd.f32 %v2577_v2, %v2576_v63  ;;  %v2558_v62 = vpop.f32.mrb[11].mxu1  ;;  %v2579_v4 = vpop.f32.mrb[14].mxu0 }
 0x281   : > { %v1567_v5 = vadd.f32 %v2556_v1, %v3443_v3  ;;  %v2580_v48 = vpop.f32.mrb[15].mxu0 }
 0x282   : > { %v1760_v6 = vadd.f32 %v2578_v46, %v3408_v29  ;;  %v1773_v29 = vmul.f32 0.85, %v1390_v54 }
 0x283   : > { %v1572_v8 = vadd.f32 %v1567_v5, %v1395_v49 }
 0x284   : > { %v1765_v25 = vadd.f32 %v1760_v6, %v1589_v52 }
 0x285   : > { %vm1573_vm5 = vcmp.gt.f32.partialorder %v1572_v8, 0.0  ;;  %2369 = vst [vmem:[%s3327_s19 + $0x10] sm:$0xff] %v1572_v8 }
 0x286   : > { %v2367_v11 = vsel %vm1573_vm5, 1.0, %v3080_v39  ;;  %vm1766_vm6 = vcmp.gt.f32.partialorder %v1765_v25, 0.0  ;;  %2389 = vst [vmem:[%s3323_s26 + $0x18] sm:$0xff] %v1765_v25  ;;  %s2914_s26 = scalar_lea.vmem %s2913_s18, 1024 }
 0x287   : > { %2368 = vst [vmem:[%s3325_s10 + $0x10] sm:$0xff] %v2367_v11  ;;  %v1782_v15 = vmul.f32 6.666668, %v2367_v11  ;;  %v2387_v16 = vsel %vm1766_vm6, 1.0, %v3080_v39  ;;  %v3514_v17 = vsub.f32 %v1779_v10, %v2367_v11  ;;  %p2916_p13 = scmp.lt.s32.totalorder %s2914_s26, %s2908_s1 }
 0x288   : > { %2388 = vst [vmem:[%s3321_s13 + $0x18] sm:$0xff] %v2387_v16  ;;  %v1774_v18 = vmul.f32 6.666668, %v2387_v16  ;;  %1968 = vst [vmem:[#allocation5] sm:$0xff] %v2387_v16 }
 0x289   : > { %v1783_v20 = vadd.f32 %v1782_v15, %v1781_v12  ;;  %1973 = vst [vmem:[#allocation10] sm:$0xff] %v3514_v17  ;;  %p2917_p2 = por %p2916_p13, %p2915_p10 }
 0x28a   : > { %v1775_v23 = vadd.f32 %v1774_v18, %v1773_v29 }
 0x28b   : > { %1976 = vst [vmem:[#allocation13] sm:$0xff] %v1783_v20  ;;  %p2918_p0 = pnand %p2917_p2, %p2911_p7 }
 0x28c   : > { %1972 = vst [vmem:[#allocation9] sm:$0xff] %v1775_v23 }
 0x28d   : > { %2921 = shalt.err (!%p2918_p0)
}
 0x28e   : > { %s2922_s14 = scalar_lea.hbm %s3526_s11, 512  ;;  %s2926_s25 = scalar_lea.hbm %s3695_s6, 1024 }
 0x28f   : > { %p2923_p6 = scmp.ne.s32.totalorder %s3526_s11, %s2922_s14  ;;  %p2927_p5 = scmp.lt.u32.totalorder %s3526_s11, %s3695_s6 }
 0x290   : > { %p2928_p9 = scmp.lt.u32.totalorder %s2926_s25, %s2922_s14  ;;  %p2930_p3 = scmp.lt.u32.totalorder %s2922_s14, %s3526_s11 }
 0x291   : > { %p2924_p8 = pnand %p2923_p6, %p3721_p1 }
 0x292   : > { %p2929_p12 = por %p2928_p9, %p2927_p5 }
 0x293   : > { %p2925_p4 = pneg %p2924_p8 }
 0x294   : > { %p2931_p11 = por %p2930_p3, %p2929_p12 }
 0x296   : > { %p2932_p7 = pnand %p2931_p11, %p2925_p4 }
 0x298   : > { %2935 = shalt.err (!%p2932_p7)
}
 0x299   : > { %s3702_s1 = smov 128   ;;  %s3083_s26 = smov 8  }
 0x29a   : > { %2615 = dma.vmem_to_hbm [thread:$0]  (%p3721_p1), %s3529_s16, 512, %s3526_s11, %s3537_s9, %s3702_s1, %s3702_s1, %s3083_s26  }
 0x29b   : > { %s2006_s2 = sshll.u32 %s3321_s13, 4  ;;  %s3084_s21 = smov [#allocation20]   ;;  %s3565_s2 = int_to_ptr.vmem [resolvable:$true] %s2006_s2 }
 0x29c   : > { %s2936_s17 = scalar_lea.vmem %s3565_s2, 512  ;;  %s2940_s25 = sshll.u32 %s3084_s21, 4  ;;  %s2941_s25 = int_to_ptr.vmem [resolvable:$false] %s2940_s25 }
 0x29d   : > { %p2937_p10 = scmp.ne.s32.totalorder %s3565_s2, %s2936_s17  ;;  %s2942_s18 = scalar_lea.vmem %s2941_s25, 1024 }
 0x29e   : > { %p2943_p0 = scmp.lt.s32.totalorder %s3565_s2, %s2941_s25  ;;  %p2944_p6 = scmp.lt.s32.totalorder %s2942_s18, %s2936_s17 }
 0x29f   : > { %p2938_p13 = pnand %p2937_p10, %p3721_p1 }
 0x2a0   : > { %p2945_p8 = por %p2944_p6, %p2943_p0 }
 0x2a1   : > { %p2939_p2 = pneg %p2938_p13 }
 0x2a3   : > { %p2946_p4 = pnand %p2945_p8, %p2939_p2 }
 0x2a5   : > { %2949 = shalt.err (!%p2946_p4)
}
 0x2a6   : > { %s2950_s13 = scalar_lea.hbm %s3535_s0, 512  ;;  %s2954_s21 = scalar_lea.hbm %s3694_s5, 1024 }
 0x2a7   : > { %p2951_p5 = scmp.ne.s32.totalorder %s3535_s0, %s2950_s13  ;;  %p2955_p3 = scmp.lt.u32.totalorder %s3535_s0, %s3694_s5 }
 0x2a8   : > { %p2956_p11 = scmp.lt.u32.totalorder %s2954_s21, %s2950_s13  ;;  %p2958_p10 = scmp.lt.u32.totalorder %s2950_s13, %s3535_s0 }
 0x2a9   : > { %p2952_p9 = pnand %p2951_p5, %p3721_p1 }
 0x2aa   : > { %p2957_p7 = por %p2956_p11, %p2955_p3 }
 0x2ab   : > { %p2953_p12 = pneg %p2952_p9 }
 0x2ac   : > { %p2959_p13 = por %p2958_p10, %p2957_p7 }
 0x2ae   : > { %p2960_p2 = pnand %p2959_p13, %p2953_p12 }
 0x2b0   : > { %2963 = shalt.err (!%p2960_p2)
}
 0x2b1   : > { %s3722_s17 = scalar_lea.sflag [#allocation16], %s3307_s15  ;;  %s2054_s14 = sshll.u32 %s3327_s19, 4  ;;  %s3604_s14 = int_to_ptr.vmem [resolvable:$true] %s2054_s14 }
 0x2b2   : > { %2614 = dma.vmem_to_hbm [thread:$0]  (%p3721_p1), %s3565_s2, 512, %s3535_s0, %s3722_s17, %s3702_s1, %s3702_s1, %s3083_s26  }
 0x2b3   : > { %s2038_s18 = sshll.u32 %s3325_s10, 4  ;;  %s3602_s16 = scalar_lea.hbm %s3697_s8, %s3520_s24  ;;  %s3613_s18 = int_to_ptr.vmem [resolvable:$true] %s2038_s18 }
 0x2b4   : > { %s3611_s21 = scalar_lea.hbm %s3696_s7, %s3520_s24  ;;  %s1993_s25 = scalar_lea.sflag [#allocation25], %s3307_s15 }
 0x2b5   : > { %s2964_s17 = scalar_lea.vmem %s3604_s14, 512  ;;  %s3085_s13 = smov [#allocation24]  }
 0x2b6   : > { %p2965_p0 = scmp.ne.s32.totalorder %s3604_s14, %s2964_s17  ;;  %s2968_s11 = sshll.u32 %s3085_s13, 4  ;;  %s2969_s11 = int_to_ptr.vmem [resolvable:$false] %s2968_s11 }
 0x2b7   : > { %s2970_s1 = scalar_lea.vmem %s2969_s11, 1024  ;;  %p2971_p4 = scmp.lt.s32.totalorder %s3604_s14, %s2969_s11 }
 0x2b8   : > { %p2966_p6 = pnand %p2965_p0, %p3721_p1  ;;  %p2972_p5 = scmp.lt.s32.totalorder %s2970_s1, %s2964_s17 }
 0x2ba   : > { %p2967_p8 = pneg %p2966_p6  ;;  %p2973_p9 = por %p2972_p5, %p2971_p4 }
 0x2bc   : > { %p2974_p12 = pnand %p2973_p9, %p2967_p8 }
 0x345   : > { %v2598_v0 = vpop.f32.mrb[12].mxu1 }
 0x346   : > { %v2599_v7 = vpop.f32.mrb[13].mxu1 }
 0x347   : > { %v2600_v13 = vadd.f32 %v2599_v7, %v2598_v0  ;;  %v2601_v24 = vpop.f32.mrb[14].mxu1 }
 0x348   : > { %v2602_v26 = vpop.f32.mrb[15].mxu1 }
 0x349   : > { %v1952_v27 = vadd.f32 %v2600_v13, %v3443_v3 }
 0x34b   : > { %v1957_v28 = vadd.f32 %v1952_v27, %v3514_v17 }
 0x34d   : > { %vm1958_vm7 = vcmp.gt.f32.partialorder %v1957_v28, 0.0  ;;  %2408 = vst [vmem:[%s3327_s19 + $0x18] sm:$0xff] %v1957_v28 }
 0x34e   : > { %v2406_v3 = vsel %vm1958_vm7, 1.0, %v3080_v39 }
 0x34f   : > { %2977 = shalt.err (!%p2974_p12)
}
 0x350   : > { %s2978_s19 = scalar_lea.hbm %s3602_s16, 512  ;;  %s2982_s2 = scalar_lea.hbm %s3697_s8, 1024 }
 0x351   : > { %p2979_p3 = scmp.ne.s32.totalorder %s3602_s16, %s2978_s19  ;;  %p2983_p10 = scmp.lt.u32.totalorder %s3602_s16, %s3697_s8 }
 0x352   : > { %p2984_p13 = scmp.lt.u32.totalorder %s2982_s2, %s2978_s19  ;;  %p2986_p0 = scmp.lt.u32.totalorder %s2978_s19, %s3602_s16 }
 0x353   : > { %p2980_p11 = pnand %p2979_p3, %p3721_p1 }
 0x354   : > { %p2985_p2 = por %p2984_p13, %p2983_p10 }
 0x355   : > { %p2981_p7 = pneg %p2980_p11 }
 0x356   : > { %p2987_p6 = por %p2986_p0, %p2985_p2 }
 0x358   : > { %p2988_p8 = pnand %p2987_p6, %p2981_p7 }
 0x35a   : > { %2991 = shalt.err (!%p2988_p8)
}
 0x35b   : > { %s3723_s1 = smov 128   ;;  %2407 = vst [vmem:[%s3325_s10 + $0x18] sm:$0xff] %v2406_v3  ;;  %1974 = vst [vmem:[#allocation11] sm:$0xff] %v2406_v3  ;;  %s2992_s17 = scalar_lea.vmem %s3613_s18, 512 }
 0x35c   : > { %2617 = dma.vmem_to_hbm [thread:$0]  (%p3721_p1), %s3604_s14, 512, %s3602_s16, %s1993_s25, %s3723_s1, %s3723_s1, %s3083_s26  }
 0x35d   : > { %p2993_p4 = scmp.ne.s32.totalorder %s3613_s18, %s2992_s17  ;;  %s3086_s19 = smov [#allocation23]  }
 0x35e   : > { %s2996_s24 = sshll.u32 %s3086_s19, 4  ;;  %s2997_s24 = int_to_ptr.vmem [resolvable:$false] %s2996_s24 }
 0x35f   : > { %p2994_p5 = pnand %p2993_p4, %p3721_p1  ;;  %s2998_s0 = scalar_lea.vmem %s2997_s24, 1024 }
 0x360   : > { %p2999_p12 = scmp.lt.s32.totalorder %s3613_s18, %s2997_s24  ;;  %p3000_p3 = scmp.lt.s32.totalorder %s2998_s0, %s2992_s17 }
 0x361   : > { %p2995_p9 = pneg %p2994_p5 }
 0x362   : > { %p3001_p11 = por %p3000_p3, %p2999_p12 }
 0x364   : > { %p3002_p7 = pnand %p3001_p11, %p2995_p9 }
 0x366   : > { %3005 = shalt.err (!%p3002_p7)
}
 0x367   : > { %s3006_s15 = scalar_lea.hbm %s3611_s21, 512  ;;  %s3010_s16 = scalar_lea.hbm %s3696_s7, 1024 }
 0x368   : > { %p3007_p10 = scmp.ne.s32.totalorder %s3611_s21, %s3006_s15  ;;  %p3011_p0 = scmp.lt.u32.totalorder %s3611_s21, %s3696_s7 }
 0x369   : > { %p3012_p6 = scmp.lt.u32.totalorder %s3010_s16, %s3006_s15  ;;  %p3014_p4 = scmp.lt.u32.totalorder %s3006_s15, %s3611_s21 }
 0x36a   : > { %p3008_p13 = pnand %p3007_p10, %p3721_p1 }
 0x36b   : > { %p3013_p8 = por %p3012_p6, %p3011_p0 }
 0x36c   : > { %p3009_p2 = pneg %p3008_p13 }
 0x36d   : > { %p3015_p5 = por %p3014_p4, %p3013_p8 }
 0x36f   : > { %p3016_p9 = pnand %p3015_p5, %p3009_p2 }
 0x371   : > { %3019 = shalt.err (!%p3016_p9)
}
 0x372   : > { %2616 = dma.vmem_to_hbm [thread:$0]  (%p3721_p1), %s3613_s18, 512, %s3611_s21, %s3537_s9, %s3723_s1, %s3723_s1, %s3083_s26  }
 0x373 PF: > { %s2069_s13 = sand.u32 1, %s3058_s27   ;;  %p3724_p12 = scmp.ne.s32.totalorder %s3708_s12, 0 }
 0x374   : > { %p3725_p3 = scmp.ge.s32.totalorder %s3070_s30, 2  ;;  %s2070_s11 = scalar_lea.sflag [#allocation16], %s2069_s13 }
 0x376   : > { %p2634_p11 = pnand %p3725_p3, %p3724_p12 }
 0x378   : > { %3045 = dma.done.wait (!%p2634_p11), %s2070_s11, 512  }
 0x379   : > { %3047 = vsyncadd (!%p2634_p11), %s2070_s11, 4294966784  ;;  %s3726_s22 = sadd.s32 4294967294, %s3070_s30  }
 0x37a   : > { %s2078_s17 = sand.u32 1, %s3726_s22  }
 0x37b   : > { %s2079_s19 = scalar_lea.sflag [#allocation22], %s2078_s17 }
 0x37c   : > { %3049 = dma.done.wait (!%p2634_p11), %s2079_s19, 1024  }
 0x37d   : > { %3051 = vsyncadd (!%p2634_p11), %s2079_s19, 4294966272  ;;  %s2097_s24 = scalar_lea.sflag [#allocation25], %s2069_s13 }
 0x37e   : > { %3053 = dma.done.wait (!%p2634_p11), %s2097_s24, 512  }
 0x37f   : > { %3055 = vsyncadd (!%p2634_p11), %s2097_s24, 4294966784  ;;  %p29_p1 = scmp.ge.s32.totalorder %s3245_s20, 4   ;;  %s3727_s27 = smov %s3062_s28 }
 0x380   : > { %s3728_s28 = smov %s3066_s29  ;;  %s3729_s29 = smov %s3261_s23 }
 0x381   : > { %s3730_s30 = smov %s3245_s20  ;;  %31 = sbr.rel (!%p29_p1) target bundleno = 14 (0xe), region = 161 }
 0x388   :  { %2102 = vsyncpa [#allocation15], 1 }
 0x389   :  { %2104 = vsyncpa [#allocation15 + $0x1], 1 }
 0x38a   :  { %2105 = vsyncpa [#allocation18], 1 }
 0x38b   :  { %2106 = vsyncpa [#allocation16], 1 }
 0x38c   :  { %2108 = vsyncpa [#allocation16 + $0x1], 1 }
 0x38d   :  { %2109 = vsyncpa [#allocation22], 1 }
 0x38e   :  { %2111 = vsyncpa [#allocation22 + $0x1], 1 }
 0x38f   :  { %2112 = vsyncpa [#allocation25], 1 }
 0x390   :  { %2114 = vsyncpa [#allocation25 + $0x1], 1 }

</bundles_post_ra>
